<compile_context>
chip_gen: v5e
topology: v5e:2x2
jax: 0.10.0
libtpu: 0.0.40
codegen_flags: <defaults>
</compile_context>

<pallas_src>
import jax
import jax.numpy as jnp
from jax import lax
from jax.experimental import pallas as pl
from jax.experimental.pallas import tpu as pltpu


def _lstm_disc_kernel(x_ref, wih0_ref, whh0_ref, b0_ref,
                      wcat1_ref, b1_ref,
                      wout_ref, bout_ref,
                      h_out_ref, prob_ref):
    """Full 2-layer LSTM recurrence + output projection, all in VMEM."""
    H = whh0_ref.shape[0]          # hidden size (static)
    seq_len = x_ref.shape[0]       # static trip count

    # ---- hoisted layer-0 input projection: one [S, in] @ [in, 4H] matmul ----
    gx0 = (jnp.dot(x_ref[...], wih0_ref[...], preferred_element_type=jnp.float32)
           + b0_ref[...])                                   # [S, 4H]

    # load weights / bias once (outside the unrolled recurrence)
    whh0 = whh0_ref[...]           # [H, 4H]
    wcat1 = wcat1_ref[...]         # [2H, 4H]  = [W_ih1^T ; W_hh1^T]
    b1 = b1_ref[...]               # [1, 4H]

    def gates_to_hc(gates, c):
        # transcendental on whole [1, 4H] vregs (EUP), then static lane slices
        sig = jax.nn.sigmoid(gates)
        th = jnp.tanh(gates)
        i = sig[:, 0 * H:1 * H]
        f = sig[:, 1 * H:2 * H]
        g = th[:, 2 * H:3 * H]
        o = sig[:, 3 * H:4 * H]
        c_new = f * c + i * g
        h_new = o * jnp.tanh(c_new)
        return h_new, c_new

    z = jnp.zeros((1, H), jnp.float32)
    h0, c0, h1, c1 = z, z, z, z

    # seq_len is static -> fully unrolled recurrence (2 dependent matmuls/step)
    for t in range(seq_len):
        # layer 0: only the recurrent matmul remains on the per-step path
        g0 = gx0[t:t + 1, :] + jnp.dot(h0, whh0, preferred_element_type=jnp.float32)
        h0, c0 = gates_to_hc(g0, c0)
        # layer 1: fused [x | h] @ [W_ih ; W_hh]
        xh = jnp.concatenate([h0, h1], axis=-1)              # [1, 2H]
        g1 = jnp.dot(xh, wcat1, preferred_element_type=jnp.float32) + b1
        h1, c1 = gates_to_hc(g1, c1)

    # last hidden state of the top LSTM layer
    h_out_ref[...] = h1
    # output projection + sigmoid as a VPU reduction (no MXU tail)
    logit = jnp.sum(h1 * wout_ref[...], axis=-1, keepdims=True) + bout_ref[...]
    prob_ref[...] = jax.nn.sigmoid(logit)


def discriminator_forward(features, params):
    """features: [seq_len, 1, input_size] (f32).  Returns (h [1,H], prob scalar)."""
    seq_len, b, input_size = features.shape
    assert b == 1, "Discriminator LSTM runs with batch=1 (as in the PyTorch module)"
    H = params["whh0"].shape[0]
    x = features.reshape(seq_len, input_size).astype(jnp.float32)

    # total resident data is tiny (<100 KiB) -> single invocation, no grid,
    # everything in VMEM; tiling would only add pipeline overhead.
    vmem = pl.BlockSpec(memory_space=pltpu.MemorySpace.VMEM)
    h_out, prob = pl.pallas_call(
        _lstm_disc_kernel,
        out_shape=(jax.ShapeDtypeStruct((1, H), jnp.float32),
                   jax.ShapeDtypeStruct((1, 1), jnp.float32)),
        in_specs=[vmem] * 8,
        out_specs=(vmem, vmem),
    )(x,
      params["wih0"], params["whh0"], params["b0"],
      params["wcat1"], params["b1"],
      params["wout"], params["bout"])
    return h_out, prob.squeeze()


# ----------------------------------------------------------------------------
# deterministic parameter construction (PyTorch nn.LSTM / nn.Linear shapes)
# ----------------------------------------------------------------------------
def make_params(key, input_size, hidden_size):
    H = hidden_size
    ks = jax.random.split(key, 12)
    s = 1.0 / jnp.sqrt(H)
    u = lambda k, shape: jax.random.uniform(k, shape, jnp.float32, -s, s)

    # layer 0
    w_ih0 = u(ks[0], (4 * H, input_size))
    w_hh0 = u(ks[1], (4 * H, H))
    b_ih0 = u(ks[2], (4 * H,))
    b_hh0 = u(ks[3], (4 * H,))
    # layer 1
    w_ih1 = u(ks[4], (4 * H, H))
    w_hh1 = u(ks[5], (4 * H, H))
    b_ih1 = u(ks[6], (4 * H,))
    b_hh1 = u(ks[7], (4 * H,))
    # output projection  Linear(H, 1)
    w_out = u(ks[8], (1, H))
    b_out = u(ks[9], (1,))

    return {
        "wih0": w_ih0.T,                                        # [in, 4H]
        "whh0": w_hh0.T,                                        # [H, 4H]
        "b0": (b_ih0 + b_hh0).reshape(1, 4 * H),
        "wcat1": jnp.concatenate([w_ih1.T, w_hh1.T], axis=0),   # [2H, 4H]
        "b1": (b_ih1 + b_hh1).reshape(1, 4 * H),
        "wout": w_out,                                          # [1, H] (row, VPU dot)
        "bout": b_out.reshape(1, 1),
    }


# pure-JAX reference (same math, lax.scan) for a correctness check
def reference_forward(features, params):
    seq_len, _, input_size = features.shape
    H = params["whh0"].shape[0]
    x = features.reshape(seq_len, input_size).astype(jnp.float32)

    def gates_to_hc(g, c):
        i = jax.nn.sigmoid(g[:, 0:H])
        f = jax.nn.sigmoid(g[:, H:2 * H])
        gg = jnp.tanh(g[:, 2 * H:3 * H])
        o = jax.nn.sigmoid(g[:, 3 * H:4 * H])
        c = f * c + i * gg
        return o * jnp.tanh(c), c

    def step(carry, x_t):
        h0, c0, h1, c1 = carry
        g0 = x_t[None, :] @ params["wih0"] + h0 @ params["whh0"] + params["b0"]
        h0, c0 = gates_to_hc(g0, c0)
        g1 = jnp.concatenate([h0, h1], axis=-1) @ params["wcat1"] + params["b1"]
        h1, c1 = gates_to_hc(g1, c1)
        return (h0, c0, h1, c1), None

    z = jnp.zeros((1, H), jnp.float32)
    (h0, c0, h1, c1), _ = lax.scan(step, (z, z, z, z), x)
    prob = jax.nn.sigmoid(
        jnp.sum(h1 * params["wout"], axis=-1, keepdims=True) + params["bout"]).squeeze()
    return h1, prob


if __name__ == "__main__":
    seq_len, input_size, hidden_size = 8, 32, 32
    key = jax.random.PRNGKey(0)
    k_feat, k_par = jax.random.split(key)

    features = jax.random.normal(k_feat, (seq_len, 1, input_size), jnp.float32)
    params = make_params(k_par, input_size, hidden_size)

    h, prob = discriminator_forward(features, params)
    jax.block_until_ready((h, prob))

    h_ref, prob_ref = reference_forward(features, params)
    assert h.shape == (1, hidden_size) and prob.shape == ()
    assert jnp.allclose(h, h_ref, atol=1e-5), "hidden mismatch vs reference"
    assert jnp.allclose(prob, prob_ref, atol=1e-5), "prob mismatch vs reference"

    print("KERNEL_OK")
</pallas_src>

<mosaic_0001>
module attributes {stable_mosaic.version = 11 : i64} {
  func.func @_lstm_disc_kernel(%arg0: memref<8x32xf32, #tpu.memory_space<vmem>>, %arg1: memref<32x128xf32, #tpu.memory_space<vmem>>, %arg2: memref<32x128xf32, #tpu.memory_space<vmem>>, %arg3: memref<1x128xf32, #tpu.memory_space<vmem>>, %arg4: memref<64x128xf32, #tpu.memory_space<vmem>>, %arg5: memref<1x128xf32, #tpu.memory_space<vmem>>, %arg6: memref<1x32xf32, #tpu.memory_space<vmem>>, %arg7: memref<1x1xf32, #tpu.memory_space<vmem>>, %arg8: memref<1x32xf32, #tpu.memory_space<vmem>>, %arg9: memref<1x1xf32, #tpu.memory_space<vmem>>) attributes {dimension_semantics = [], scalar_prefetch = 0 : i64, scratch_operands = 0 : i64, tpu.core_type = #tpu.core_type<tc>} {
    %c0 = arith.constant 0 : index
    %c0_0 = arith.constant 0 : index
    %0 = vector.load %arg0[%c0, %c0_0] : memref<8x32xf32, #tpu.memory_space<vmem>>, vector<8x32xf32>
    %c0_1 = arith.constant 0 : index
    %c0_2 = arith.constant 0 : index
    %1 = vector.load %arg1[%c0_1, %c0_2] : memref<32x128xf32, #tpu.memory_space<vmem>>, vector<32x128xf32>
    %cst = arith.constant dense<0.000000e+00> : vector<8x128xf32>
    %2 = tpu.matmul %0, %1, %cst {dimension_numbers = #tpu.dot_dimension_numbers<[1], [0], [0], [1], [0, 0, 1, 1], [], []>} : vector<8x32xf32>, vector<32x128xf32>, vector<8x128xf32> -> vector<8x128xf32>
    %c0_3 = arith.constant 0 : index
    %c0_4 = arith.constant 0 : index
    %3 = vector.load %arg3[%c0_3, %c0_4] : memref<1x128xf32, #tpu.memory_space<vmem>>, vector<1x128xf32>
    %4 = vector.broadcast %3 : vector<1x128xf32> to vector<8x128xf32>
    %5 = arith.addf %2, %4 : vector<8x128xf32>
    %c0_5 = arith.constant 0 : index
    %c0_6 = arith.constant 0 : index
    %6 = vector.load %arg2[%c0_5, %c0_6] : memref<32x128xf32, #tpu.memory_space<vmem>>, vector<32x128xf32>
    %c0_7 = arith.constant 0 : index
    %c0_8 = arith.constant 0 : index
    %7 = vector.load %arg4[%c0_7, %c0_8] : memref<64x128xf32, #tpu.memory_space<vmem>>, vector<64x128xf32>
    %c0_9 = arith.constant 0 : index
    %c0_10 = arith.constant 0 : index
    %8 = vector.load %arg5[%c0_9, %c0_10] : memref<1x128xf32, #tpu.memory_space<vmem>>, vector<1x128xf32>
    %cst_11 = arith.constant 0.000000e+00 : f32
    %9 = vector.broadcast %cst_11 : f32 to vector<1x32xf32>
    %10 = vector.extract_strided_slice %5 {offsets = [0, 0], sizes = [1, 128], strides = [1, 1]} : vector<8x128xf32> to vector<1x128xf32>
    %cst_12 = arith.constant dense<0.000000e+00> : vector<1x128xf32>
    %11 = tpu.matmul %9, %6, %cst_12 {dimension_numbers = #tpu.dot_dimension_numbers<[1], [0], [0], [1], [0, 0, 1, 1], [], []>} : vector<1x32xf32>, vector<32x128xf32>, vector<1x128xf32> -> vector<1x128xf32>
    %12 = arith.addf %10, %11 : vector<1x128xf32>
    %13 = arith.negf %12 : vector<1x128xf32>
    %14 = math.exp %13 : vector<1x128xf32>
    %cst_13 = arith.constant 1.000000e+00 : f32
    %15 = vector.broadcast %cst_13 : f32 to vector<1x128xf32>
    %16 = arith.addf %15, %14 : vector<1x128xf32>
    %17 = arith.divf %15, %16 : vector<1x128xf32>
    %18 = math.tanh %12 : vector<1x128xf32>
    %19 = vector.extract_strided_slice %17 {offsets = [0, 0], sizes = [1, 32], strides = [1, 1]} : vector<1x128xf32> to vector<1x32xf32>
    %20 = vector.extract_strided_slice %17 {offsets = [0, 32], sizes = [1, 32], strides = [1, 1]} : vector<1x128xf32> to vector<1x32xf32>
    %21 = vector.extract_strided_slice %18 {offsets = [0, 64], sizes = [1, 32], strides = [1, 1]} : vector<1x128xf32> to vector<1x32xf32>
    %22 = vector.extract_strided_slice %17 {offsets = [0, 96], sizes = [1, 32], strides = [1, 1]} : vector<1x128xf32> to vector<1x32xf32>
    %23 = arith.mulf %20, %9 : vector<1x32xf32>
    %24 = arith.mulf %19, %21 : vector<1x32xf32>
    %25 = arith.addf %23, %24 : vector<1x32xf32>
    %26 = math.tanh %25 : vector<1x32xf32>
    %27 = arith.mulf %22, %26 : vector<1x32xf32>
    %28 = tpu.concatenate %27, %9 in 1 : vector<1x32xf32>, vector<1x32xf32> -> vector<1x64xf32>
    %cst_14 = arith.constant dense<0.000000e+00> : vector<1x128xf32>
    %29 = tpu.matmul %28, %7, %cst_14 {dimension_numbers = #tpu.dot_dimension_numbers<[1], [0], [0], [1], [0, 0, 1, 1], [], []>} : vector<1x64xf32>, vector<64x128xf32>, vector<1x128xf32> -> vector<1x128xf32>
    %30 = arith.addf %29, %8 : vector<1x128xf32>
    %31 = arith.negf %30 : vector<1x128xf32>
    %32 = math.exp %31 : vector<1x128xf32>
    %cst_15 = arith.constant 1.000000e+00 : f32
    %33 = vector.broadcast %cst_15 : f32 to vector<1x128xf32>
    %34 = arith.addf %33, %32 : vector<1x128xf32>
    %35 = arith.divf %33, %34 : vector<1x128xf32>
    %36 = math.tanh %30 : vector<1x128xf32>
    %37 = vector.extract_strided_slice %35 {offsets = [0, 0], sizes = [1, 32], strides = [1, 1]} : vector<1x128xf32> to vector<1x32xf32>
    %38 = vector.extract_strided_slice %35 {offsets = [0, 32], sizes = [1, 32], strides = [1, 1]} : vector<1x128xf32> to vector<1x32xf32>
    %39 = vector.extract_strided_slice %36 {offsets = [0, 64], sizes = [1, 32], strides = [1, 1]} : vector<1x128xf32> to vector<1x32xf32>
    %40 = vector.extract_strided_slice %35 {offsets = [0, 96], sizes = [1, 32], strides = [1, 1]} : vector<1x128xf32> to vector<1x32xf32>
    %41 = arith.mulf %38, %9 : vector<1x32xf32>
    %42 = arith.mulf %37, %39 : vector<1x32xf32>
    %43 = arith.addf %41, %42 : vector<1x32xf32>
    %44 = math.tanh %43 : vector<1x32xf32>
    %45 = arith.mulf %40, %44 : vector<1x32xf32>
    %46 = vector.extract_strided_slice %5 {offsets = [1, 0], sizes = [1, 128], strides = [1, 1]} : vector<8x128xf32> to vector<1x128xf32>
    %cst_16 = arith.constant dense<0.000000e+00> : vector<1x128xf32>
    %47 = tpu.matmul %27, %6, %cst_16 {dimension_numbers = #tpu.dot_dimension_numbers<[1], [0], [0], [1], [0, 0, 1, 1], [], []>} : vector<1x32xf32>, vector<32x128xf32>, vector<1x128xf32> -> vector<1x128xf32>
    %48 = arith.addf %46, %47 : vector<1x128xf32>
    %49 = arith.negf %48 : vector<1x128xf32>
    %50 = math.exp %49 : vector<1x128xf32>
    %cst_17 = arith.constant 1.000000e+00 : f32
    %51 = vector.broadcast %cst_17 : f32 to vector<1x128xf32>
    %52 = arith.addf %51, %50 : vector<1x128xf32>
    %53 = arith.divf %51, %52 : vector<1x128xf32>
    %54 = math.tanh %48 : vector<1x128xf32>
    %55 = vector.extract_strided_slice %53 {offsets = [0, 0], sizes = [1, 32], strides = [1, 1]} : vector<1x128xf32> to vector<1x32xf32>
    %56 = vector.extract_strided_slice %53 {offsets = [0, 32], sizes = [1, 32], strides = [1, 1]} : vector<1x128xf32> to vector<1x32xf32>
    %57 = vector.extract_strided_slice %54 {offsets = [0, 64], sizes = [1, 32], strides = [1, 1]} : vector<1x128xf32> to vector<1x32xf32>
    %58 = vector.extract_strided_slice %53 {offsets = [0, 96], sizes = [1, 32], strides = [1, 1]} : vector<1x128xf32> to vector<1x32xf32>
    %59 = arith.mulf %56, %25 : vector<1x32xf32>
    %60 = arith.mulf %55, %57 : vector<1x32xf32>
    %61 = arith.addf %59, %60 : vector<1x32xf32>
    %62 = math.tanh %61 : vector<1x32xf32>
    %63 = arith.mulf %58, %62 : vector<1x32xf32>
    %64 = tpu.concatenate %63, %45 in 1 : vector<1x32xf32>, vector<1x32xf32> -> vector<1x64xf32>
    %cst_18 = arith.constant dense<0.000000e+00> : vector<1x128xf32>
    %65 = tpu.matmul %64, %7, %cst_18 {dimension_numbers = #tpu.dot_dimension_numbers<[1], [0], [0], [1], [0, 0, 1, 1], [], []>} : vector<1x64xf32>, vector<64x128xf32>, vector<1x128xf32> -> vector<1x128xf32>
    %66 = arith.addf %65, %8 : vector<1x128xf32>
    %67 = arith.negf %66 : vector<1x128xf32>
    %68 = math.exp %67 : vector<1x128xf32>
    %cst_19 = arith.constant 1.000000e+00 : f32
    %69 = vector.broadcast %cst_19 : f32 to vector<1x128xf32>
    %70 = arith.addf %69, %68 : vector<1x128xf32>
    %71 = arith.divf %69, %70 : vector<1x128xf32>
    %72 = math.tanh %66 : vector<1x128xf32>
    %73 = vector.extract_strided_slice %71 {offsets = [0, 0], sizes = [1, 32], strides = [1, 1]} : vector<1x128xf32> to vector<1x32xf32>
    %74 = vector.extract_strided_slice %71 {offsets = [0, 32], sizes = [1, 32], strides = [1, 1]} : vector<1x128xf32> to vector<1x32xf32>
    %75 = vector.extract_strided_slice %72 {offsets = [0, 64], sizes = [1, 32], strides = [1, 1]} : vector<1x128xf32> to vector<1x32xf32>
    %76 = vector.extract_strided_slice %71 {offsets = [0, 96], sizes = [1, 32], strides = [1, 1]} : vector<1x128xf32> to vector<1x32xf32>
    %77 = arith.mulf %74, %43 : vector<1x32xf32>
    %78 = arith.mulf %73, %75 : vector<1x32xf32>
    %79 = arith.addf %77, %78 : vector<1x32xf32>
    %80 = math.tanh %79 : vector<1x32xf32>
    %81 = arith.mulf %76, %80 : vector<1x32xf32>
    %82 = vector.extract_strided_slice %5 {offsets = [2, 0], sizes = [1, 128], strides = [1, 1]} : vector<8x128xf32> to vector<1x128xf32>
    %cst_20 = arith.constant dense<0.000000e+00> : vector<1x128xf32>
    %83 = tpu.matmul %63, %6, %cst_20 {dimension_numbers = #tpu.dot_dimension_numbers<[1], [0], [0], [1], [0, 0, 1, 1], [], []>} : vector<1x32xf32>, vector<32x128xf32>, vector<1x128xf32> -> vector<1x128xf32>
    %84 = arith.addf %82, %83 : vector<1x128xf32>
    %85 = arith.negf %84 : vector<1x128xf32>
    %86 = math.exp %85 : vector<1x128xf32>
    %cst_21 = arith.constant 1.000000e+00 : f32
    %87 = vector.broadcast %cst_21 : f32 to vector<1x128xf32>
    %88 = arith.addf %87, %86 : vector<1x128xf32>
    %89 = arith.divf %87, %88 : vector<1x128xf32>
    %90 = math.tanh %84 : vector<1x128xf32>
    %91 = vector.extract_strided_slice %89 {offsets = [0, 0], sizes = [1, 32], strides = [1, 1]} : vector<1x128xf32> to vector<1x32xf32>
    %92 = vector.extract_strided_slice %89 {offsets = [0, 32], sizes = [1, 32], strides = [1, 1]} : vector<1x128xf32> to vector<1x32xf32>
    %93 = vector.extract_strided_slice %90 {offsets = [0, 64], sizes = [1, 32], strides = [1, 1]} : vector<1x128xf32> to vector<1x32xf32>
    %94 = vector.extract_strided_slice %89 {offsets = [0, 96], sizes = [1, 32], strides = [1, 1]} : vector<1x128xf32> to vector<1x32xf32>
    %95 = arith.mulf %92, %61 : vector<1x32xf32>
    %96 = arith.mulf %91, %93 : vector<1x32xf32>
    %97 = arith.addf %95, %96 : vector<1x32xf32>
    %98 = math.tanh %97 : vector<1x32xf32>
    %99 = arith.mulf %94, %98 : vector<1x32xf32>
    %100 = tpu.concatenate %99, %81 in 1 : vector<1x32xf32>, vector<1x32xf32> -> vector<1x64xf32>
    %cst_22 = arith.constant dense<0.000000e+00> : vector<1x128xf32>
    %101 = tpu.matmul %100, %7, %cst_22 {dimension_numbers = #tpu.dot_dimension_numbers<[1], [0], [0], [1], [0, 0, 1, 1], [], []>} : vector<1x64xf32>, vector<64x128xf32>, vector<1x128xf32> -> vector<1x128xf32>
    %102 = arith.addf %101, %8 : vector<1x128xf32>
    %103 = arith.negf %102 : vector<1x128xf32>
    %104 = math.exp %103 : vector<1x128xf32>
    %cst_23 = arith.constant 1.000000e+00 : f32
    %105 = vector.broadcast %cst_23 : f32 to vector<1x128xf32>
    %106 = arith.addf %105, %104 : vector<1x128xf32>
    %107 = arith.divf %105, %106 : vector<1x128xf32>
    %108 = math.tanh %102 : vector<1x128xf32>
    %109 = vector.extract_strided_slice %107 {offsets = [0, 0], sizes = [1, 32], strides = [1, 1]} : vector<1x128xf32> to vector<1x32xf32>
    %110 = vector.extract_strided_slice %107 {offsets = [0, 32], sizes = [1, 32], strides = [1, 1]} : vector<1x128xf32> to vector<1x32xf32>
    %111 = vector.extract_strided_slice %108 {offsets = [0, 64], sizes = [1, 32], strides = [1, 1]} : vector<1x128xf32> to vector<1x32xf32>
    %112 = vector.extract_strided_slice %107 {offsets = [0, 96], sizes = [1, 32], strides = [1, 1]} : vector<1x128xf32> to vector<1x32xf32>
    %113 = arith.mulf %110, %79 : vector<1x32xf32>
    %114 = arith.mulf %109, %111 : vector<1x32xf32>
    %115 = arith.addf %113, %114 : vector<1x32xf32>
    %116 = math.tanh %115 : vector<1x32xf32>
    %117 = arith.mulf %112, %116 : vector<1x32xf32>
    %118 = vector.extract_strided_slice %5 {offsets = [3, 0], sizes = [1, 128], strides = [1, 1]} : vector<8x128xf32> to vector<1x128xf32>
    %cst_24 = arith.constant dense<0.000000e+00> : vector<1x128xf32>
    %119 = tpu.matmul %99, %6, %cst_24 {dimension_numbers = #tpu.dot_dimension_numbers<[1], [0], [0], [1], [0, 0, 1, 1], [], []>} : vector<1x32xf32>, vector<32x128xf32>, vector<1x128xf32> -> vector<1x128xf32>
    %120 = arith.addf %118, %119 : vector<1x128xf32>
    %121 = arith.negf %120 : vector<1x128xf32>
    %122 = math.exp %121 : vector<1x128xf32>
    %cst_25 = arith.constant 1.000000e+00 : f32
    %123 = vector.broadcast %cst_25 : f32 to vector<1x128xf32>
    %124 = arith.addf %123, %122 : vector<1x128xf32>
    %125 = arith.divf %123, %124 : vector<1x128xf32>
    %126 = math.tanh %120 : vector<1x128xf32>
    %127 = vector.extract_strided_slice %125 {offsets = [0, 0], sizes = [1, 32], strides = [1, 1]} : vector<1x128xf32> to vector<1x32xf32>
    %128 = vector.extract_strided_slice %125 {offsets = [0, 32], sizes = [1, 32], strides = [1, 1]} : vector<1x128xf32> to vector<1x32xf32>
    %129 = vector.extract_strided_slice %126 {offsets = [0, 64], sizes = [1, 32], strides = [1, 1]} : vector<1x128xf32> to vector<1x32xf32>
    %130 = vector.extract_strided_slice %125 {offsets = [0, 96], sizes = [1, 32], strides = [1, 1]} : vector<1x128xf32> to vector<1x32xf32>
    %131 = arith.mulf %128, %97 : vector<1x32xf32>
    %132 = arith.mulf %127, %129 : vector<1x32xf32>
    %133 = arith.addf %131, %132 : vector<1x32xf32>
    %134 = math.tanh %133 : vector<1x32xf32>
    %135 = arith.mulf %130, %134 : vector<1x32xf32>
    %136 = tpu.concatenate %135, %117 in 1 : vector<1x32xf32>, vector<1x32xf32> -> vector<1x64xf32>
    %cst_26 = arith.constant dense<0.000000e+00> : vector<1x128xf32>
    %137 = tpu.matmul %136, %7, %cst_26 {dimension_numbers = #tpu.dot_dimension_numbers<[1], [0], [0], [1], [0, 0, 1, 1], [], []>} : vector<1x64xf32>, vector<64x128xf32>, vector<1x128xf32> -> vector<1x128xf32>
    %138 = arith.addf %137, %8 : vector<1x128xf32>
    %139 = arith.negf %138 : vector<1x128xf32>
    %140 = math.exp %139 : vector<1x128xf32>
    %cst_27 = arith.constant 1.000000e+00 : f32
    %141 = vector.broadcast %cst_27 : f32 to vector<1x128xf32>
    %142 = arith.addf %141, %140 : vector<1x128xf32>
    %143 = arith.divf %141, %142 : vector<1x128xf32>
    %144 = math.tanh %138 : vector<1x128xf32>
    %145 = vector.extract_strided_slice %143 {offsets = [0, 0], sizes = [1, 32], strides = [1, 1]} : vector<1x128xf32> to vector<1x32xf32>
    %146 = vector.extract_strided_slice %143 {offsets = [0, 32], sizes = [1, 32], strides = [1, 1]} : vector<1x128xf32> to vector<1x32xf32>
    %147 = vector.extract_strided_slice %144 {offsets = [0, 64], sizes = [1, 32], strides = [1, 1]} : vector<1x128xf32> to vector<1x32xf32>
    %148 = vector.extract_strided_slice %143 {offsets = [0, 96], sizes = [1, 32], strides = [1, 1]} : vector<1x128xf32> to vector<1x32xf32>
    %149 = arith.mulf %146, %115 : vector<1x32xf32>
    %150 = arith.mulf %145, %147 : vector<1x32xf32>
    %151 = arith.addf %149, %150 : vector<1x32xf32>
    %152 = math.tanh %151 : vector<1x32xf32>
    %153 = arith.mulf %148, %152 : vector<1x32xf32>
    %154 = vector.extract_strided_slice %5 {offsets = [4, 0], sizes = [1, 128], strides = [1, 1]} : vector<8x128xf32> to vector<1x128xf32>
    %cst_28 = arith.constant dense<0.000000e+00> : vector<1x128xf32>
    %155 = tpu.matmul %135, %6, %cst_28 {dimension_numbers = #tpu.dot_dimension_numbers<[1], [0], [0], [1], [0, 0, 1, 1], [], []>} : vector<1x32xf32>, vector<32x128xf32>, vector<1x128xf32> -> vector<1x128xf32>
    %156 = arith.addf %154, %155 : vector<1x128xf32>
    %157 = arith.negf %156 : vector<1x128xf32>
    %158 = math.exp %157 : vector<1x128xf32>
    %cst_29 = arith.constant 1.000000e+00 : f32
    %159 = vector.broadcast %cst_29 : f32 to vector<1x128xf32>
    %160 = arith.addf %159, %158 : vector<1x128xf32>
    %161 = arith.divf %159, %160 : vector<1x128xf32>
    %162 = math.tanh %156 : vector<1x128xf32>
    %163 = vector.extract_strided_slice %161 {offsets = [0, 0], sizes = [1, 32], strides = [1, 1]} : vector<1x128xf32> to vector<1x32xf32>
    %164 = vector.extract_strided_slice %161 {offsets = [0, 32], sizes = [1, 32], strides = [1, 1]} : vector<1x128xf32> to vector<1x32xf32>
    %165 = vector.extract_strided_slice %162 {offsets = [0, 64], sizes = [1, 32], strides = [1, 1]} : vector<1x128xf32> to vector<1x32xf32>
    %166 = vector.extract_strided_slice %161 {offsets = [0, 96], sizes = [1, 32], strides = [1, 1]} : vector<1x128xf32> to vector<1x32xf32>
    %167 = arith.mulf %164, %133 : vector<1x32xf32>
    %168 = arith.mulf %163, %165 : vector<1x32xf32>
    %169 = arith.addf %167, %168 : vector<1x32xf32>
    %170 = math.tanh %169 : vector<1x32xf32>
    %171 = arith.mulf %166, %170 : vector<1x32xf32>
    %172 = tpu.concatenate %171, %153 in 1 : vector<1x32xf32>, vector<1x32xf32> -> vector<1x64xf32>
    %cst_30 = arith.constant dense<0.000000e+00> : vector<1x128xf32>
    %173 = tpu.matmul %172, %7, %cst_30 {dimension_numbers = #tpu.dot_dimension_numbers<[1], [0], [0], [1], [0, 0, 1, 1], [], []>} : vector<1x64xf32>, vector<64x128xf32>, vector<1x128xf32> -> vector<1x128xf32>
    %174 = arith.addf %173, %8 : vector<1x128xf32>
    %175 = arith.negf %174 : vector<1x128xf32>
    %176 = math.exp %175 : vector<1x128xf32>
    %cst_31 = arith.constant 1.000000e+00 : f32
    %177 = vector.broadcast %cst_31 : f32 to vector<1x128xf32>
    %178 = arith.addf %177, %176 : vector<1x128xf32>
    %179 = arith.divf %177, %178 : vector<1x128xf32>
    %180 = math.tanh %174 : vector<1x128xf32>
    %181 = vector.extract_strided_slice %179 {offsets = [0, 0], sizes = [1, 32], strides = [1, 1]} : vector<1x128xf32> to vector<1x32xf32>
    %182 = vector.extract_strided_slice %179 {offsets = [0, 32], sizes = [1, 32], strides = [1, 1]} : vector<1x128xf32> to vector<1x32xf32>
    %183 = vector.extract_strided_slice %180 {offsets = [0, 64], sizes = [1, 32], strides = [1, 1]} : vector<1x128xf32> to vector<1x32xf32>
    %184 = vector.extract_strided_slice %179 {offsets = [0, 96], sizes = [1, 32], strides = [1, 1]} : vector<1x128xf32> to vector<1x32xf32>
    %185 = arith.mulf %182, %151 : vector<1x32xf32>
    %186 = arith.mulf %181, %183 : vector<1x32xf32>
    %187 = arith.addf %185, %186 : vector<1x32xf32>
    %188 = math.tanh %187 : vector<1x32xf32>
    %189 = arith.mulf %184, %188 : vector<1x32xf32>
    %190 = vector.extract_strided_slice %5 {offsets = [5, 0], sizes = [1, 128], strides = [1, 1]} : vector<8x128xf32> to vector<1x128xf32>
    %cst_32 = arith.constant dense<0.000000e+00> : vector<1x128xf32>
    %191 = tpu.matmul %171, %6, %cst_32 {dimension_numbers = #tpu.dot_dimension_numbers<[1], [0], [0], [1], [0, 0, 1, 1], [], []>} : vector<1x32xf32>, vector<32x128xf32>, vector<1x128xf32> -> vector<1x128xf32>
    %192 = arith.addf %190, %191 : vector<1x128xf32>
    %193 = arith.negf %192 : vector<1x128xf32>
    %194 = math.exp %193 : vector<1x128xf32>
    %cst_33 = arith.constant 1.000000e+00 : f32
    %195 = vector.broadcast %cst_33 : f32 to vector<1x128xf32>
    %196 = arith.addf %195, %194 : vector<1x128xf32>
    %197 = arith.divf %195, %196 : vector<1x128xf32>
    %198 = math.tanh %192 : vector<1x128xf32>
    %199 = vector.extract_strided_slice %197 {offsets = [0, 0], sizes = [1, 32], strides = [1, 1]} : vector<1x128xf32> to vector<1x32xf32>
    %200 = vector.extract_strided_slice %197 {offsets = [0, 32], sizes = [1, 32], strides = [1, 1]} : vector<1x128xf32> to vector<1x32xf32>
    %201 = vector.extract_strided_slice %198 {offsets = [0, 64], sizes = [1, 32], strides = [1, 1]} : vector<1x128xf32> to vector<1x32xf32>
    %202 = vector.extract_strided_slice %197 {offsets = [0, 96], sizes = [1, 32], strides = [1, 1]} : vector<1x128xf32> to vector<1x32xf32>
    %203 = arith.mulf %200, %169 : vector<1x32xf32>
    %204 = arith.mulf %199, %201 : vector<1x32xf32>
    %205 = arith.addf %203, %204 : vector<1x32xf32>
    %206 = math.tanh %205 : vector<1x32xf32>
    %207 = arith.mulf %202, %206 : vector<1x32xf32>
    %208 = tpu.concatenate %207, %189 in 1 : vector<1x32xf32>, vector<1x32xf32> -> vector<1x64xf32>
    %cst_34 = arith.constant dense<0.000000e+00> : vector<1x128xf32>
    %209 = tpu.matmul %208, %7, %cst_34 {dimension_numbers = #tpu.dot_dimension_numbers<[1], [0], [0], [1], [0, 0, 1, 1], [], []>} : vector<1x64xf32>, vector<64x128xf32>, vector<1x128xf32> -> vector<1x128xf32>
    %210 = arith.addf %209, %8 : vector<1x128xf32>
    %211 = arith.negf %210 : vector<1x128xf32>
    %212 = math.exp %211 : vector<1x128xf32>
    %cst_35 = arith.constant 1.000000e+00 : f32
    %213 = vector.broadcast %cst_35 : f32 to vector<1x128xf32>
    %214 = arith.addf %213, %212 : vector<1x128xf32>
    %215 = arith.divf %213, %214 : vector<1x128xf32>
    %216 = math.tanh %210 : vector<1x128xf32>
    %217 = vector.extract_strided_slice %215 {offsets = [0, 0], sizes = [1, 32], strides = [1, 1]} : vector<1x128xf32> to vector<1x32xf32>
    %218 = vector.extract_strided_slice %215 {offsets = [0, 32], sizes = [1, 32], strides = [1, 1]} : vector<1x128xf32> to vector<1x32xf32>
    %219 = vector.extract_strided_slice %216 {offsets = [0, 64], sizes = [1, 32], strides = [1, 1]} : vector<1x128xf32> to vector<1x32xf32>
    %220 = vector.extract_strided_slice %215 {offsets = [0, 96], sizes = [1, 32], strides = [1, 1]} : vector<1x128xf32> to vector<1x32xf32>
    %221 = arith.mulf %218, %187 : vector<1x32xf32>
    %222 = arith.mulf %217, %219 : vector<1x32xf32>
    %223 = arith.addf %221, %222 : vector<1x32xf32>
    %224 = math.tanh %223 : vector<1x32xf32>
    %225 = arith.mulf %220, %224 : vector<1x32xf32>
    %226 = vector.extract_strided_slice %5 {offsets = [6, 0], sizes = [1, 128], strides = [1, 1]} : vector<8x128xf32> to vector<1x128xf32>
    %cst_36 = arith.constant dense<0.000000e+00> : vector<1x128xf32>
    %227 = tpu.matmul %207, %6, %cst_36 {dimension_numbers = #tpu.dot_dimension_numbers<[1], [0], [0], [1], [0, 0, 1, 1], [], []>} : vector<1x32xf32>, vector<32x128xf32>, vector<1x128xf32> -> vector<1x128xf32>
    %228 = arith.addf %226, %227 : vector<1x128xf32>
    %229 = arith.negf %228 : vector<1x128xf32>
    %230 = math.exp %229 : vector<1x128xf32>
    %cst_37 = arith.constant 1.000000e+00 : f32
    %231 = vector.broadcast %cst_37 : f32 to vector<1x128xf32>
    %232 = arith.addf %231, %230 : vector<1x128xf32>
    %233 = arith.divf %231, %232 : vector<1x128xf32>
    %234 = math.tanh %228 : vector<1x128xf32>
    %235 = vector.extract_strided_slice %233 {offsets = [0, 0], sizes = [1, 32], strides = [1, 1]} : vector<1x128xf32> to vector<1x32xf32>
    %236 = vector.extract_strided_slice %233 {offsets = [0, 32], sizes = [1, 32], strides = [1, 1]} : vector<1x128xf32> to vector<1x32xf32>
    %237 = vector.extract_strided_slice %234 {offsets = [0, 64], sizes = [1, 32], strides = [1, 1]} : vector<1x128xf32> to vector<1x32xf32>
    %238 = vector.extract_strided_slice %233 {offsets = [0, 96], sizes = [1, 32], strides = [1, 1]} : vector<1x128xf32> to vector<1x32xf32>
    %239 = arith.mulf %236, %205 : vector<1x32xf32>
    %240 = arith.mulf %235, %237 : vector<1x32xf32>
    %241 = arith.addf %239, %240 : vector<1x32xf32>
    %242 = math.tanh %241 : vector<1x32xf32>
    %243 = arith.mulf %238, %242 : vector<1x32xf32>
    %244 = tpu.concatenate %243, %225 in 1 : vector<1x32xf32>, vector<1x32xf32> -> vector<1x64xf32>
    %cst_38 = arith.constant dense<0.000000e+00> : vector<1x128xf32>
    %245 = tpu.matmul %244, %7, %cst_38 {dimension_numbers = #tpu.dot_dimension_numbers<[1], [0], [0], [1], [0, 0, 1, 1], [], []>} : vector<1x64xf32>, vector<64x128xf32>, vector<1x128xf32> -> vector<1x128xf32>
    %246 = arith.addf %245, %8 : vector<1x128xf32>
    %247 = arith.negf %246 : vector<1x128xf32>
    %248 = math.exp %247 : vector<1x128xf32>
    %cst_39 = arith.constant 1.000000e+00 : f32
    %249 = vector.broadcast %cst_39 : f32 to vector<1x128xf32>
    %250 = arith.addf %249, %248 : vector<1x128xf32>
    %251 = arith.divf %249, %250 : vector<1x128xf32>
    %252 = math.tanh %246 : vector<1x128xf32>
    %253 = vector.extract_strided_slice %251 {offsets = [0, 0], sizes = [1, 32], strides = [1, 1]} : vector<1x128xf32> to vector<1x32xf32>
    %254 = vector.extract_strided_slice %251 {offsets = [0, 32], sizes = [1, 32], strides = [1, 1]} : vector<1x128xf32> to vector<1x32xf32>
    %255 = vector.extract_strided_slice %252 {offsets = [0, 64], sizes = [1, 32], strides = [1, 1]} : vector<1x128xf32> to vector<1x32xf32>
    %256 = vector.extract_strided_slice %251 {offsets = [0, 96], sizes = [1, 32], strides = [1, 1]} : vector<1x128xf32> to vector<1x32xf32>
    %257 = arith.mulf %254, %223 : vector<1x32xf32>
    %258 = arith.mulf %253, %255 : vector<1x32xf32>
    %259 = arith.addf %257, %258 : vector<1x32xf32>
    %260 = math.tanh %259 : vector<1x32xf32>
    %261 = arith.mulf %256, %260 : vector<1x32xf32>
    %262 = vector.extract_strided_slice %5 {offsets = [7, 0], sizes = [1, 128], strides = [1, 1]} : vector<8x128xf32> to vector<1x128xf32>
    %cst_40 = arith.constant dense<0.000000e+00> : vector<1x128xf32>
    %263 = tpu.matmul %243, %6, %cst_40 {dimension_numbers = #tpu.dot_dimension_numbers<[1], [0], [0], [1], [0, 0, 1, 1], [], []>} : vector<1x32xf32>, vector<32x128xf32>, vector<1x128xf32> -> vector<1x128xf32>
    %264 = arith.addf %262, %263 : vector<1x128xf32>
    %265 = arith.negf %264 : vector<1x128xf32>
    %266 = math.exp %265 : vector<1x128xf32>
    %cst_41 = arith.constant 1.000000e+00 : f32
    %267 = vector.broadcast %cst_41 : f32 to vector<1x128xf32>
    %268 = arith.addf %267, %266 : vector<1x128xf32>
    %269 = arith.divf %267, %268 : vector<1x128xf32>
    %270 = math.tanh %264 : vector<1x128xf32>
    %271 = vector.extract_strided_slice %269 {offsets = [0, 0], sizes = [1, 32], strides = [1, 1]} : vector<1x128xf32> to vector<1x32xf32>
    %272 = vector.extract_strided_slice %269 {offsets = [0, 32], sizes = [1, 32], strides = [1, 1]} : vector<1x128xf32> to vector<1x32xf32>
    %273 = vector.extract_strided_slice %270 {offsets = [0, 64], sizes = [1, 32], strides = [1, 1]} : vector<1x128xf32> to vector<1x32xf32>
    %274 = vector.extract_strided_slice %269 {offsets = [0, 96], sizes = [1, 32], strides = [1, 1]} : vector<1x128xf32> to vector<1x32xf32>
    %275 = arith.mulf %272, %241 : vector<1x32xf32>
    %276 = arith.mulf %271, %273 : vector<1x32xf32>
    %277 = arith.addf %275, %276 : vector<1x32xf32>
    %278 = math.tanh %277 : vector<1x32xf32>
    %279 = arith.mulf %274, %278 : vector<1x32xf32>
    %280 = tpu.concatenate %279, %261 in 1 : vector<1x32xf32>, vector<1x32xf32> -> vector<1x64xf32>
    %cst_42 = arith.constant dense<0.000000e+00> : vector<1x128xf32>
    %281 = tpu.matmul %280, %7, %cst_42 {dimension_numbers = #tpu.dot_dimension_numbers<[1], [0], [0], [1], [0, 0, 1, 1], [], []>} : vector<1x64xf32>, vector<64x128xf32>, vector<1x128xf32> -> vector<1x128xf32>
    %282 = arith.addf %281, %8 : vector<1x128xf32>
    %283 = arith.negf %282 : vector<1x128xf32>
    %284 = math.exp %283 : vector<1x128xf32>
    %cst_43 = arith.constant 1.000000e+00 : f32
    %285 = vector.broadcast %cst_43 : f32 to vector<1x128xf32>
    %286 = arith.addf %285, %284 : vector<1x128xf32>
    %287 = arith.divf %285, %286 : vector<1x128xf32>
    %288 = math.tanh %282 : vector<1x128xf32>
    %289 = vector.extract_strided_slice %287 {offsets = [0, 0], sizes = [1, 32], strides = [1, 1]} : vector<1x128xf32> to vector<1x32xf32>
    %290 = vector.extract_strided_slice %287 {offsets = [0, 32], sizes = [1, 32], strides = [1, 1]} : vector<1x128xf32> to vector<1x32xf32>
    %291 = vector.extract_strided_slice %288 {offsets = [0, 64], sizes = [1, 32], strides = [1, 1]} : vector<1x128xf32> to vector<1x32xf32>
    %292 = vector.extract_strided_slice %287 {offsets = [0, 96], sizes = [1, 32], strides = [1, 1]} : vector<1x128xf32> to vector<1x32xf32>
    %293 = arith.mulf %290, %259 : vector<1x32xf32>
    %294 = arith.mulf %289, %291 : vector<1x32xf32>
    %295 = arith.addf %293, %294 : vector<1x32xf32>
    %296 = math.tanh %295 : vector<1x32xf32>
    %297 = arith.mulf %292, %296 : vector<1x32xf32>
    %c0_44 = arith.constant 0 : index
    %c0_45 = arith.constant 0 : index
    %298 = vector.load %arg8[%c0_44, %c0_45] : memref<1x32xf32, #tpu.memory_space<vmem>>, vector<1x32xf32>
    tpu.vector_store %arg8[%c0_44, %c0_45], %297 {strides = array<i32>} : memref<1x32xf32, #tpu.memory_space<vmem>>, vector<1x32xf32>,
    %c0_46 = arith.constant 0 : index
    %c0_47 = arith.constant 0 : index
    %299 = vector.load %arg6[%c0_46, %c0_47] : memref<1x32xf32, #tpu.memory_space<vmem>>, vector<1x32xf32>
    %300 = arith.mulf %297, %299 : vector<1x32xf32>
    %cst_48 = arith.constant dense<0.000000e+00> : vector<1xf32>
    %301 = vector.multi_reduction <add>, %300, %cst_48 [1] : vector<1x32xf32> to vector<1xf32>
    %302 = vector.shape_cast %301 : vector<1xf32> to vector<1x1xf32>
    %c0_49 = arith.constant 0 : index
    %c0_50 = arith.constant 0 : index
    %303 = vector.load %arg7[%c0_49, %c0_50] : memref<1x1xf32, #tpu.memory_space<vmem>>, vector<1x1xf32>
    %304 = arith.addf %302, %303 : vector<1x1xf32>
    %305 = arith.negf %304 : vector<1x1xf32>
    %306 = math.exp %305 : vector<1x1xf32>
    %cst_51 = arith.constant 1.000000e+00 : f32
    %307 = vector.broadcast %cst_51 : f32 to vector<1x1xf32>
    %308 = arith.addf %307, %306 : vector<1x1xf32>
    %309 = arith.divf %307, %308 : vector<1x1xf32>
    %c0_52 = arith.constant 0 : index
    %c0_53 = arith.constant 0 : index
    %310 = vector.load %arg9[%c0_52, %c0_53] : memref<1x1xf32, #tpu.memory_space<vmem>>, vector<1x1xf32>
    tpu.vector_store %arg9[%c0_52, %c0_53], %309 {strides = array<i32>} : memref<1x1xf32, #tpu.memory_space<vmem>>, vector<1x1xf32>,
    return
  }
}

</mosaic_0001>

<bundles_post_ra>
// kernel: tpu_custom_call.1
= control target key start
LH: loop header
LB: loop body
LE: loop exit
PB: predicated region body
PF: predicated region fallthrough
CT: control target
= control target key end

     0   :  { %s2042_s0 = inlined_call_operand.hbm [shape: f32[8,32], index: 0, kind: input, shape index: {}]   ;;  %s2043_s1 = inlined_call_operand.hbm [shape: f32[32,128], index: 1, kind: input, shape index: {}]   ;;  %s2044_s2 = inlined_call_operand.hbm [shape: f32[32,128], index: 2, kind: input, shape index: {}]   ;;  %s2045_s3 = inlined_call_operand.vmem [shape: f32[1,128], index: 3, kind: input, shape index: {}]   ;;  %s2046_s4 = inlined_call_operand.hbm [shape: f32[64,128], index: 4, kind: input, shape index: {}]   ;;  %s2047_s5 = inlined_call_operand.vmem [shape: f32[1,128], index: 5, kind: input, shape index: {}]   ;;  %s2048_s6 = inlined_call_operand.vmem [shape: f32[1,32], index: 6, kind: input, shape index: {}]   ;;  %s2049_s7 = inlined_call_operand.<no memory space> [shape: f32[1,1], index: 7, kind: input, shape index: {}]   ;;  %s2050_s8 = inlined_call_operand.hbm [shape: f32[1,32], index: 8, kind: output, shape index: {0}]   ;;  %s2051_s9 = inlined_call_operand.hbm [shape: f32[1,1], index: 9, kind: output, shape index: {1}]  }
   0x1   :  { %v15_v0 = vstv %s2049_s7 }
   0x2   :  { %16 = vst [vmem:[#allocation2] sm:$0x1] %v15_v0 }
   0x3   :  { %17 = vsyncpa [#allocation4], 0 }
   0x4   :  { %18 = vsyncpa [#allocation7], 0 }
   0x5   :  { %19 = vsyncpa [#allocation10], 0 }
   0x6   :  { %20 = vsyncpa [#allocation5], 0  ;;  %s37_s13 = sshll.u32 %s2043_s1, 4  ;;  %s38_s13 = int_to_ptr.hbm [resolvable:$true] %s37_s13 }
   0x7   :  { %21 = vsyncpa [#allocation13], 0  ;;  %s1658_s14 = smov [#allocation6]   ;;  %s27_s18 = sshll.u32 %s2042_s0, 4  ;;  %s28_s18 = int_to_ptr.hbm [resolvable:$true] %s27_s18 }
   0x8   :  { %s39_s15 = sshll.u32 %s1658_s14, 4  ;;  %s1659_s19 = smov 128   ;;  %s40_s15 = int_to_ptr.vmem [resolvable:$true] %s39_s15 }
   0x9   :  { %s1660_s7 = smov 8   ;;  %s1661_s20 = smov [#allocation3]  }
   0xa   :  { %45 = dma.hbm_to_vmem [thread:$0]  %s38_s13, 512, %s40_s15, [#allocation7], %s1659_s19, %s1659_s19, %s1660_s7  }
   0xb   :  { %s29_s21 = sshll.u32 %s1661_s20, 4  ;;  %s50_s24 = sshll.u32 %s2044_s2, 4  ;;  %s30_s21 = int_to_ptr.vmem [resolvable:$true] %s29_s21  ;;  %s51_s24 = int_to_ptr.hbm [resolvable:$true] %s50_s24 }
   0xc   :  { %32 = dma.hbm_to_vmem [thread:$0]  %s28_s18, 128, %s30_s21, [#allocation4]  }
   0xd   :  { %s65_s26 = sshll.u32 %s2046_s4, 4  ;;  %s1662_s27 = smov [#allocation8]   ;;  %s66_s26 = int_to_ptr.hbm [resolvable:$true] %s65_s26 }
   0xe   :  { %s52_s28 = sshll.u32 %s1662_s27, 4  ;;  %s1663_s0 = smov [#allocation9]   ;;  %s53_s28 = int_to_ptr.vmem [resolvable:$true] %s52_s28 }
   0xf   :  { %58 = dma.hbm_to_vmem [thread:$0]  %s51_s24, 512, %s53_s28, [#allocation7], %s1659_s19, %s1659_s19, %s1660_s7  }
  0x10   :  { %s67_s29 = sshll.u32 %s1663_s0, 4  ;;  %s68_s29 = int_to_ptr.vmem [resolvable:$true] %s67_s29 }
  0x11   :  { %73 = dma.hbm_to_vmem [thread:$0]  %s66_s26, 1024, %s68_s29, [#allocation10], %s1659_s19, %s1659_s19, %s1660_s7  }
  0x12   :  { %1648 = dma.done.wait [#allocation4], 128  }
  0x13   :  { %1649 = vsyncadd [#allocation4], 4294967168 }
  0x14   :  { %1650 = dma.done.wait [#allocation7], 1024  }
  0x15   :  { %1651 = vsyncadd [#allocation7], 4294966272 }
  0x16   :  { %1652 = dma.done.wait [#allocation10], 1024  }
  0x17   :  { %1653 = vsyncadd [#allocation10], 4294966272  ;;  %v100_v1 = vld [vmem:[#allocation6 + $0x18] sm:$0xff]  ;;  %v99_v2 = vld [vmem:[#allocation6 + $0x10] sm:$0xff]  ;;  %vm105_vm0 = vcmask 261120   ;;  %v1664_v10 = vmov 0.0  }
  0x18   :  { %v1735_v3 = vld [vmem:[#allocation8 + $0x18] sm:$0xff]  ;;  %121 = vmatpush.msra.mxu0 %v100_v1  ;;  %v1738_v4 = vld [vmem:[#allocation8 + $0x10] sm:$0xff]  ;;  %v98_v5 = vld [vmem:[#allocation6 + $0x8] sm:$0xff]  ;;  %s1665_s30 = smov 64   ;;  %vm208_vm5 = vcmask 523264   ;;  %s1667_s15 = smov 96  }
  0x19   :  { %157 = vmatpush.msra.mxu1 %v1735_v3  ;;  %v1740_v6 = vld [vmem:[#allocation8 + $0x8] sm:$0xff]  ;;  %283 = vmatpush.msra.mxu3 %v1735_v3  ;;  %v97_v7 = vld [vmem:[#allocation6] sm:$0xff]  ;;  %v96_v9 = vld [vmem:[#allocation3] sm:$0xff]  ;;  %s1296_s17 = sshll.u32 %s2050_s8, 4  ;;  %s1668_s18 = smov [#allocation11]   ;;  %s1297_s17 = int_to_ptr.hbm [resolvable:$true] %s1296_s17 }
  0x1a   :  { %122 = vmatpush.msra.mxu0 %v99_v2  ;;  %v1744_v8 = vld [vmem:[#allocation8] sm:$0xff]  ;;  %v1369_v11 = vld [vmem:[%s2045_s3] ss:$0 sm:$0xff]  ;;  %s1666_s3 = smov 32   ;;  %v1772_v36 = vld [vmem:[#allocation9 + $0x38] sm:$0xff]  ;;  %s1294_s19 = sshll.u32 %s1668_s18, 4  ;;  %s1295_s19 = int_to_ptr.vmem [resolvable:$true] %s1294_s19 }
  0x1b   :  { %158 = vmatpush.msra.mxu1 %v1738_v4  ;;  %284 = vmatpush.msra.mxu3 %v1738_v4  ;;  %v1774_v37 = vld [vmem:[#allocation9 + $0x30] sm:$0xff]  ;;  %v1778_v38 = vld [vmem:[#allocation9 + $0x28] sm:$0xff]  ;;  %v1783_v39 = vld [vmem:[#allocation9 + $0x20] sm:$0xff]  ;;  %s1669_s8 = smov [#allocation12]   ;;  %s1307_s22 = sshll.u32 %s2051_s9, 4  ;;  %s1308_s22 = int_to_ptr.hbm [resolvable:$true] %s1307_s22 }
  0x1c   :  { %123 = vmatpush.msra.mxu0 %v98_v5  ;;  %220 = vmatpush.msra.mxu2 %v1772_v36  ;;  %v1788_v40 = vld [vmem:[#allocation9 + $0x18] sm:$0xff]  ;;  %v1793_v41 = vld [vmem:[#allocation9 + $0x10] sm:$0xff]  ;;  %v1798_v42 = vld [vmem:[#allocation9 + $0x8] sm:$0xff]  ;;  %s1305_s7 = sshll.u32 %s1669_s8, 4  ;;  %s1306_s7 = int_to_ptr.vmem [resolvable:$true] %s1305_s7 }
  0x1d   :  { %159 = vmatpush.msra.mxu1 %v1740_v6  ;;  %285 = vmatpush.msra.mxu3 %v1740_v6  ;;  %v1808_v45 = vld [vmem:[#allocation9] sm:$0xff]  ;;  %v1839_v48 = vld [vmem:[%s2047_s5] sm:$0x1] }
  0x1e   :  { %124 = vmatpush.msra.mxu0 %v97_v7  ;;  %221 = vmatpush.msra.mxu2 %v1774_v37 }
  0x1f   :  { %160 = vmatpush.msra.mxu1 %v1744_v8  ;;  %1324 = vmatmul.msk.f32.vlgmr.msra.gmra.mxu0 %vm105_vm0, %v96_v9 }
  0x20   :  { %161 = vmatmul.f32.vlgmr.msra.gmra.mxu1 %v1664_v10  ;;  %286 = vmatpush.msra.mxu3 %v1744_v8 }
  0x21   :  { %423 = vmatpush.msrb.mxu1 %v1735_v3  ;;  %357 = vmatpush.msrb.mxu0 %v1772_v36 }
  0x22   :  { %497 = vmatpush.msrb.mxu3 %v1772_v36  ;;  %222 = vmatpush.msra.mxu2 %v1778_v38 }
  0x23   :  { %424 = vmatpush.msrb.mxu1 %v1738_v4  ;;  %358 = vmatpush.msrb.mxu0 %v1774_v37 }
  0x24   :  { %498 = vmatpush.msrb.mxu3 %v1774_v37  ;;  %223 = vmatpush.msra.mxu2 %v1783_v39 }
  0x25   :  { %425 = vmatpush.msrb.mxu1 %v1740_v6  ;;  %359 = vmatpush.msrb.mxu0 %v1778_v38 }
  0x26   :  { %499 = vmatpush.msrb.mxu3 %v1778_v38  ;;  %224 = vmatpush.msra.mxu2 %v1788_v40 }
  0x27   :  { %426 = vmatpush.msrb.mxu1 %v1744_v8  ;;  %360 = vmatpush.msrb.mxu0 %v1783_v39 }
  0x28   :  { %500 = vmatpush.msrb.mxu3 %v1783_v39  ;;  %225 = vmatpush.msra.mxu2 %v1793_v41 }
  0x29   :  { %563 = vmatpush.msra.mxu1 %v1735_v3  ;;  %361 = vmatpush.msrb.mxu0 %v1788_v40 }
  0x2a   :  { %501 = vmatpush.msrb.mxu3 %v1788_v40  ;;  %226 = vmatpush.msra.mxu2 %v1798_v42 }
  0x2b   :  { %564 = vmatpush.msra.mxu1 %v1738_v4  ;;  %362 = vmatpush.msrb.mxu0 %v1793_v41 }
  0x2c   :  { %502 = vmatpush.msrb.mxu3 %v1793_v41  ;;  %227 = vmatpush.msra.mxu2 %v1808_v45 }
  0x2d   :  { %565 = vmatpush.msra.mxu1 %v1740_v6  ;;  %363 = vmatpush.msrb.mxu0 %v1798_v42 }
  0x2e   :  { %503 = vmatpush.msrb.mxu3 %v1798_v42  ;;  %637 = vmatpush.msrb.mxu2 %v1772_v36 }
  0x2f   :  { %566 = vmatpush.msra.mxu1 %v1744_v8  ;;  %364 = vmatpush.msrb.mxu0 %v1808_v45 }
  0x30   :  { %504 = vmatpush.msrb.mxu3 %v1808_v45  ;;  %638 = vmatpush.msrb.mxu2 %v1774_v37 }
  0x31   :  { %703 = vmatpush.msra.mxu0 %v1735_v3 }
  0x32   :  { %639 = vmatpush.msrb.mxu2 %v1778_v38 }
  0x33   :  { %704 = vmatpush.msra.mxu0 %v1738_v4 }
  0x34   :  { %640 = vmatpush.msrb.mxu2 %v1783_v39 }
  0x35   :  { %705 = vmatpush.msra.mxu0 %v1740_v6 }
  0x36   :  { %641 = vmatpush.msrb.mxu2 %v1788_v40 }
  0x37   :  { %706 = vmatpush.msra.mxu0 %v1744_v8 }
  0x38   :  { %642 = vmatpush.msrb.mxu2 %v1793_v41 }
  0x3a   :  { %643 = vmatpush.msrb.mxu2 %v1798_v42 }
  0x3c   :  { %644 = vmatpush.msrb.mxu2 %v1808_v45 }
  0x9c   :  { %v126_v12 = vpop.f32.mrf.mxu0 }
  0x9d   :  { %v162_v13 = vpop.f32.mrf.mxu1  ;;  %v1763_v14 = vadd.f32 %v1369_v11, %v126_v12 }
  0x9f   :  { %v165_v15 = vadd.f32 %v162_v13, %v1763_v14 }
  0xa1   :  { %1371 = vtanh.f32 %v165_v15  ;;  %v1325_v17 = vmul.f32 -1.442695, %v165_v15 }
  0xa3   :  { %1373 = vpow2.f32 %v1325_v17 }
  0xa7   :  { %v1372_v16 = vpop.eup %1371 }
  0xa8   :  { %188 = vrot.lane.b32.xlu0 %v1372_v16, %s1665_s30 }
  0xa9   :  { %v1374_v18 = vpop.eup %1373 }
  0xaa   :  { %v169_v19 = vadd.f32 1.0, %v1374_v18 }
  0xac   :  { %1375 = vrcp.f32 %v169_v19  ;;  %v181_v25 = vand.u32 2147483648, %v169_v19  ;;  %vm175_vm2 = vweird.f32 %v169_v19  ;;  %v179_v26 = vand.u32 2147483647, %v169_v19 }
  0xae   :  { %v182_v28 = vor.u32 1.1754944e-38, %v181_v25  ;;  %vm180_vm4 = vcmp.eq.f32.partialorder %v179_v26, 8.507059e+37 }
  0xb2   :  { %v1376_v20 = vpop.eup %1375 }
  0xb3   :  { %v171_v21 = vmul.f32 %v1376_v20, %v169_v19  ;;  %vm176_vm1 = vweird.f32 %v1376_v20 }
  0xb4   :  { %vm177_vm3 = vmor %vm175_vm2, %vm176_vm1 }
  0xb5   :  { %v172_v22 = vsub.f32 1.0, %v171_v21 }
  0xb7   :  { %v173_v23 = vmul.f32 %v1376_v20, %v172_v22 }
  0xb9   :  { %v174_v24 = vadd.f32 %v1376_v20, %v173_v23 }
  0xbb   :  { %v178_v27 = vsel %vm177_vm3, %v1376_v20, %v174_v24 }
  0xbc   :  { %v183_v30 = vsel %vm180_vm4, %v182_v28, %v178_v27 }
  0xbd   :  { %v186_v32 = vmul.f32 0.0, %v183_v30 }
 0x11a   :  { %v189_v29 = vpop.permute.xlu0 %188 }
 0x11b   :  { %v191_v31 = vmul.f32 %v189_v29, %v183_v30 }
 0x11d   :  { %193 = vrot.lane.b32.xlu0 %v191_v31, %s1666_s3 }
 0x18f   :  { %v194_v33 = vpop.permute.xlu0 %193 }
 0x190   :  { %v1768_v34 = vadd.f32 %v194_v33, %v186_v32 }
 0x192   :  { %1377 = vtanh.f32 %v1768_v34 }
 0x198   :  { %v1378_v35 = vpop.eup %1377 }
 0x199   :  { %199 = vrot.lane.b32.xlu1 %v1378_v35, %s1665_s30 }
 0x20b   :  { %v200_v43 = vpop.permute.xlu1 %199 }
 0x20c   :  { %v202_v44 = vmul.f32 %v200_v43, %v183_v30  ;;  %v316_v30 = vrot.slane %v1768_v34, 7 }
 0x20e   :  { %204 = vrot.lane.b32.xlu1 %v202_v44, %s1666_s3 }
 0x280   :  { %v205_v46 = vpop.permute.xlu1 %204 }
 0x281   :  { %1328 = vmatmul.msk.f32.vlgmr.msra.gmra.mxu3 %vm105_vm0, %v205_v46  ;;  %v207_v47 = vsel %vm105_vm0, %v205_v46, 0.0 }
 0x282   :  { %1326 = vmatmul.msk.f32.vlgmr.msra.gmra.mxu2 %vm208_vm5, %v207_v47  ;;  %843 = vmatpush.msra.mxu3 %v1735_v3 }
 0x283   :  { %983 = vmatpush.msra.mxu2 %v1735_v3 }
 0x284   :  { %844 = vmatpush.msra.mxu3 %v1738_v4 }
 0x285   :  { %984 = vmatpush.msra.mxu2 %v1738_v4 }
 0x286   :  { %845 = vmatpush.msra.mxu3 %v1740_v6 }
 0x287   :  { %985 = vmatpush.msra.mxu2 %v1740_v6 }
 0x288   :  { %846 = vmatpush.msra.mxu3 %v1744_v8 }
 0x289   :  { %986 = vmatpush.msra.mxu2 %v1744_v8 }
 0x304   :  { %v288_v49 = vpop.f32.mrf.mxu3 }
 0x305   :  { %v229_v50 = vpop.f32.mrf.mxu2  ;;  %v292_v52 = vrot.slane %v288_v49, 7 }
 0x306   :  { %v230_v51 = vadd.f32 %v229_v50, %v1839_v48 }
 0x307   :  { %v294_v53 = vadd.f32 %v292_v52, %v1763_v14 }
 0x308   :  { %1379 = vtanh.f32 %v230_v51  ;;  %v1327_v56 = vmul.f32 -1.442695, %v230_v51 }
 0x309   :  { %1381 = vtanh.f32 %v294_v53  ;;  %v1329_v57 = vmul.f32 -1.442695, %v294_v53 }
 0x30a   :  { %1383 = vpow2.f32 %v1327_v56 }
 0x30b   :  { %1385 = vpow2.f32 %v1329_v57 }
 0x30e   :  { %v1380_v54 = vpop.eup %1379 }
 0x30f   :  { %254 = vrot.lane.b32.xlu2 %v1380_v54, %s1665_s30  ;;  %v1382_v55 = vpop.eup %1381 }
 0x310   :  { %v1384_v58 = vpop.eup %1383 }
 0x311   :  { %v235_v59 = vadd.f32 1.0, %v1384_v58  ;;  %v1386_v60 = vpop.eup %1385 }
 0x312   :  { %v298_v61 = vadd.f32 1.0, %v1386_v60 }
 0x313   :  { %1387 = vrcp.f32 %v235_v59  ;;  %v247_v10 = vand.u32 2147483648, %v235_v59  ;;  %vm241_vm7 = vweird.f32 %v235_v59  ;;  %v245_v11 = vand.u32 2147483647, %v235_v59 }
 0x314   :  { %1389 = vrcp.f32 %v298_v61  ;;  %v310_v20 = vand.u32 2147483648, %v298_v61  ;;  %vm304_vm11 = vweird.f32 %v298_v61  ;;  %v308_v21 = vand.u32 2147483647, %v298_v61 }
 0x315   :  { %v248_v15 = vor.u32 1.1754944e-38, %v247_v10  ;;  %vm246_vm9 = vcmp.eq.f32.partialorder %v245_v11, 8.507059e+37 }
 0x316   :  { %v311_v23 = vor.u32 1.1754944e-38, %v310_v20  ;;  %vm309_vm13 = vcmp.eq.f32.partialorder %v308_v21, 8.507059e+37 }
 0x317   :  { %320 = vrot.lane.b32.xlu2 %v1382_v55, %s1665_s30 }
 0x319   :  { %v1388_v62 = vpop.eup %1387 }
 0x31a   :  { %v237_v63 = vmul.f32 %v1388_v62, %v235_v59  ;;  %v1390_v1 = vpop.eup %1389  ;;  %vm242_vm6 = vweird.f32 %v1388_v62 }
 0x31b   :  { %v300_v5 = vmul.f32 %v1390_v1, %v298_v61  ;;  %vm243_vm8 = vmor %vm241_vm7, %vm242_vm6  ;;  %vm305_vm10 = vweird.f32 %v1390_v1 }
 0x31c   :  { %v238_v0 = vsub.f32 1.0, %v237_v63  ;;  %vm306_vm12 = vmor %vm304_vm11, %vm305_vm10 }
 0x31d   :  { %v301_v9 = vsub.f32 1.0, %v300_v5 }
 0x31e   :  { %v239_v2 = vmul.f32 %v1388_v62, %v238_v0 }
 0x31f   :  { %v302_v13 = vmul.f32 %v1390_v1, %v301_v9 }
 0x320   :  { %v240_v7 = vadd.f32 %v1388_v62, %v239_v2 }
 0x321   :  { %v303_v19 = vadd.f32 %v1390_v1, %v302_v13 }
 0x322   :  { %v244_v12 = vsel %vm243_vm8, %v1388_v62, %v240_v7 }
 0x323   :  { %v249_v17 = vsel %vm246_vm9, %v248_v15, %v244_v12  ;;  %v307_v22 = vsel %vm306_vm12, %v1390_v1, %v303_v19 }
 0x324   :  { %v312_v24 = vsel %vm309_vm13, %v311_v23, %v307_v22  ;;  %v252_v27 = vmul.f32 0.0, %v249_v17 }
 0x325   :  { %v318_v31 = vmul.f32 %v316_v30, %v312_v24 }
 0x369   :  { %v255_v16 = vpop.permute.xlu2 %254 }
 0x36a   :  { %v257_v18 = vmul.f32 %v255_v16, %v249_v17 }
 0x36c   :  { %259 = vrot.lane.b32.xlu0 %v257_v18, %s1666_s3 }
 0x371   :  { %v321_v25 = vpop.permute.xlu2 %320 }
 0x372   :  { %v323_v26 = vmul.f32 %v321_v25, %v312_v24 }
 0x374   :  { %325 = vrot.lane.b32.xlu1 %v323_v26, %s1666_s3 }
 0x3de   :  { %v260_v28 = vpop.permute.xlu0 %259 }
 0x3df   :  { %v1847_v29 = vadd.f32 %v260_v28, %v252_v27 }
 0x3e1   :  { %1391 = vtanh.f32 %v1847_v29 }
 0x3e6   :  { %v326_v32 = vpop.permute.xlu1 %325 }
 0x3e7   :  { %v1392_v33 = vpop.eup %1391  ;;  %v1851_v35 = vadd.f32 %v326_v32, %v318_v31 }
 0x3e8   :  { %265 = vrot.lane.b32.xlu2 %v1392_v33, %s1665_s30 }
 0x3e9   :  { %1393 = vtanh.f32 %v1851_v35 }
 0x3ef   :  { %v1394_v43 = vpop.eup %1393 }
 0x3f0   :  { %331 = vrot.lane.b32.xlu0 %v1394_v43, %s1665_s30 }
 0x442   :  { %v266_v44 = vpop.permute.xlu2 %265 }
 0x443   :  { %v268_v46 = vmul.f32 %v266_v44, %v249_v17  ;;  %v456_v44 = vrot.slane %v1851_v35, 7 }
 0x445   :  { %v340_v47 = vrot.slane %v268_v46, 7 }
 0x447   :  { %341 = vrot.lane.b32.xlu2 %v340_v47, %s1665_s30 }
 0x462   :  { %v332_v49 = vpop.permute.xlu0 %331 }
 0x463   :  { %v334_v50 = vmul.f32 %v332_v49, %v312_v24 }
 0x465   :  { %v406_v34 = vrot.slane %v334_v50, 1  ;;  %336 = vrot.lane.b32.xlu1 %v334_v50, %s1666_s3 }
 0x467   :  { %407 = vrot.lane.b32.xlu0 %v406_v34, %s1666_s3 }
 0x4a1   :  { %v342_v51 = vpop.permute.xlu2 %341 }
 0x4d7   :  { %v337_v52 = vpop.permute.xlu1 %336 }
 0x4d8   :  { %v344_v53 = vsel %vm105_vm0, %v337_v52, %v342_v51 }
 0x4d9   :  { %v346_v54 = vrot.slane %v344_v53, 1  ;;  %v408_v55 = vpop.permute.xlu0 %407 }
 0x4da   :  { %1332 = vmatmul.msk.f32.vlgmr.msrb.gmra.mxu1 %vm105_vm0, %v408_v55 }
 0x4db   :  { %1330 = vmatmul.msk.f32.vlgmr.msrb.gmra.mxu0 %vm208_vm5, %v346_v54  ;;  %777 = vmatpush.msrb.mxu1 %v1772_v36 }
 0x4dc   :  { %917 = vmatpush.msrb.mxu0 %v1772_v36 }
 0x4dd   :  { %778 = vmatpush.msrb.mxu1 %v1774_v37 }
 0x4de   :  { %918 = vmatpush.msrb.mxu0 %v1774_v37 }
 0x4df   :  { %779 = vmatpush.msrb.mxu1 %v1778_v38 }
 0x4e0   :  { %919 = vmatpush.msrb.mxu0 %v1778_v38 }
 0x4e1   :  { %780 = vmatpush.msrb.mxu1 %v1783_v39 }
 0x4e2   :  { %920 = vmatpush.msrb.mxu0 %v1783_v39 }
 0x4e3   :  { %781 = vmatpush.msrb.mxu1 %v1788_v40 }
 0x4e4   :  { %921 = vmatpush.msrb.mxu0 %v1788_v40 }
 0x4e5   :  { %782 = vmatpush.msrb.mxu1 %v1793_v41 }
 0x4e6   :  { %922 = vmatpush.msrb.mxu0 %v1793_v41 }
 0x4e7   :  { %783 = vmatpush.msrb.mxu1 %v1798_v42 }
 0x4e8   :  { %923 = vmatpush.msrb.mxu0 %v1798_v42 }
 0x4e9   :  { %784 = vmatpush.msrb.mxu1 %v1808_v45 }
 0x4ea   :  { %924 = vmatpush.msrb.mxu0 %v1808_v45 }
 0x557   :  { %v428_v56 = vpop.f32.mrf.mxu1 }
 0x558   :  { %v432_v57 = vrot.slane %v428_v56, 6  ;;  %v366_v58 = vpop.f32.mrf.mxu0 }
 0x559   :  { %v367_v59 = vadd.f32 %v366_v58, %v1839_v48 }
 0x55a   :  { %v434_v60 = vadd.f32 %v432_v57, %v1763_v14 }
 0x55b   :  { %1395 = vtanh.f32 %v367_v59  ;;  %v1331_v5 = vmul.f32 -1.442695, %v367_v59 }
 0x55c   :  { %1397 = vtanh.f32 %v434_v60  ;;  %v1333_v63 = vmul.f32 -1.442695, %v434_v60 }
 0x55e   :  { %1399 = vpow2.f32 %v1333_v63 }
 0x561   :  { %v1396_v61 = vpop.eup %1395 }
 0x562   :  { %v1398_v62 = vpop.eup %1397  ;;  %391 = vrot.lane.b32.xlu1 %v1396_v61, %s1665_s30 }
 0x563   :  { %460 = vrot.lane.b32.xlu2 %v1398_v62, %s1665_s30 }
 0x564   :  { %v1400_v0 = vpop.eup %1399 }
 0x565   :  { %v438_v1 = vadd.f32 1.0, %v1400_v0 }
 0x567   :  { %1401 = vrcp.f32 %v438_v1  ;;  %v450_v15 = vand.u32 2147483648, %v438_v1  ;;  %vm444_vm15 = vweird.f32 %v438_v1  ;;  %v448_v16 = vand.u32 2147483647, %v438_v1 }
 0x568   :  { %1403 = vpow2.f32 %v1331_v5 }
 0x569   :  { %v451_v18 = vor.u32 1.1754944e-38, %v450_v15  ;;  %vm449_vm2 = vcmp.eq.f32.partialorder %v448_v16, 8.507059e+37 }
 0x56d   :  { %v1402_v2 = vpop.eup %1401 }
 0x56e   :  { %v440_v7 = vmul.f32 %v1402_v2, %v438_v1  ;;  %v1404_v10 = vpop.eup %1403  ;;  %vm445_vm14 = vweird.f32 %v1402_v2 }
 0x56f   :  { %v372_v12 = vadd.f32 1.0, %v1404_v10  ;;  %vm446_vm1 = vmor %vm444_vm15, %vm445_vm14 }
 0x570   :  { %v441_v9 = vsub.f32 1.0, %v440_v7 }
 0x571   :  { %1405 = vrcp.f32 %v372_v12  ;;  %v384_v27 = vand.u32 2147483648, %v372_v12  ;;  %vm378_vm4 = vweird.f32 %v372_v12  ;;  %v382_v28 = vand.u32 2147483647, %v372_v12 }
 0x572   :  { %v442_v11 = vmul.f32 %v1402_v2, %v441_v9 }
 0x573   :  { %v385_v31 = vor.u32 1.1754944e-38, %v384_v27  ;;  %vm383_vm7 = vcmp.eq.f32.partialorder %v382_v28, 8.507059e+37 }
 0x574   :  { %v443_v13 = vadd.f32 %v1402_v2, %v442_v11 }
 0x576   :  { %v447_v17 = vsel %vm446_vm1, %v1402_v2, %v443_v13 }
 0x577   :  { %v452_v19 = vsel %vm449_vm2, %v451_v18, %v447_v17  ;;  %v1406_v21 = vpop.eup %1405 }
 0x578   :  { %v374_v23 = vmul.f32 %v1406_v21, %v372_v12  ;;  %vm379_vm3 = vweird.f32 %v1406_v21  ;;  %v458_v46 = vmul.f32 %v456_v44, %v452_v19 }
 0x579   :  { %vm380_vm6 = vmor %vm378_vm4, %vm379_vm3 }
 0x57a   :  { %v375_v24 = vsub.f32 1.0, %v374_v23 }
 0x57c   :  { %v376_v25 = vmul.f32 %v1406_v21, %v375_v24 }
 0x57e   :  { %v377_v26 = vadd.f32 %v1406_v21, %v376_v25 }
 0x580   :  { %v381_v30 = vsel %vm380_vm6, %v1406_v21, %v377_v26 }
 0x581   :  { %v386_v33 = vsel %vm383_vm7, %v385_v31, %v381_v30 }
 0x582   :  { %v389_v34 = vmul.f32 %v386_v33, %v1847_v29 }
 0x5bd   :  { %v461_v20 = vpop.permute.xlu2 %460 }
 0x5be   :  { %v463_v22 = vmul.f32 %v461_v20, %v452_v19 }
 0x5c0   :  { %465 = vrot.lane.b32.xlu1 %v463_v22, %s1666_s3 }
 0x5d4   :  { %v392_v32 = vpop.permute.xlu1 %391 }
 0x5d5   :  { %v394_v43 = vmul.f32 %v392_v32, %v386_v33 }
 0x5d7   :  { %396 = vrot.lane.b32.xlu0 %v394_v43, %s1666_s3 }
 0x632   :  { %v466_v47 = vpop.permute.xlu1 %465 }
 0x633   :  { %v1885_v49 = vadd.f32 %v466_v47, %v458_v46 }
 0x635   :  { %1407 = vtanh.f32 %v1885_v49 }
 0x63b   :  { %v1408_v50 = vpop.eup %1407 }
 0x63c   :  { %471 = vrot.lane.b32.xlu0 %v1408_v50, %s1665_s30 }
 0x649   :  { %v397_v51 = vpop.permute.xlu0 %396 }
 0x64a   :  { %v1890_v52 = vadd.f32 %v397_v51, %v389_v34 }
 0x64c   :  { %1409 = vtanh.f32 %v1890_v52 }
 0x652   :  { %v1410_v53 = vpop.eup %1409 }
 0x653   :  { %402 = vrot.lane.b32.xlu2 %v1410_v53, %s1665_s30 }
 0x6ad   :  { %v403_v35 = vpop.permute.xlu2 %402 }
 0x6ae   :  { %v405_v54 = vmul.f32 %v403_v35, %v386_v33  ;;  %v472_v55 = vpop.permute.xlu0 %471  ;;  %v596_v35 = vrot.slane %v1885_v49, 7 }
 0x6af   :  { %v474_v56 = vmul.f32 %v472_v55, %v452_v19 }
 0x6b0   :  { %v480_v57 = vrot.slane %v405_v54, 6 }
 0x6b1   :  { %v546_v58 = vrot.slane %v474_v56, 2  ;;  %476 = vrot.lane.b32.xlu1 %v474_v56, %s1666_s3 }
 0x6b2   :  { %481 = vrot.lane.b32.xlu2 %v480_v57, %s1665_s30 }
 0x6b3   :  { %547 = vrot.lane.b32.xlu0 %v546_v58, %s1666_s3 }
 0x70c   :  { %v482_v29 = vpop.permute.xlu2 %481 }
 0x723   :  { %v477_v59 = vpop.permute.xlu1 %476 }
 0x724   :  { %v484_v60 = vsel %vm105_vm0, %v477_v59, %v482_v29 }
 0x725   :  { %v486_v61 = vrot.slane %v484_v60, 2  ;;  %v548_v62 = vpop.permute.xlu0 %547 }
 0x726   :  { %1336 = vmatmul.msk.f32.vlgmr.msra.gmra.mxu1 %vm105_vm0, %v548_v62 }
 0x727   :  { %1334 = vmatmul.msk.f32.vlgmr.msrb.gmra.mxu3 %vm208_vm5, %v486_v61  ;;  %1123 = vmatpush.msra.mxu1 %v1735_v3 }
 0x728   :  { %1057 = vmatpush.msrb.mxu3 %v1772_v36 }
 0x729   :  { %1124 = vmatpush.msra.mxu1 %v1738_v4 }
 0x72a   :  { %1058 = vmatpush.msrb.mxu3 %v1774_v37 }
 0x72b   :  { %1125 = vmatpush.msra.mxu1 %v1740_v6 }
 0x72c   :  { %1059 = vmatpush.msrb.mxu3 %v1778_v38 }
 0x72d   :  { %1126 = vmatpush.msra.mxu1 %v1744_v8 }
 0x72e   :  { %1060 = vmatpush.msrb.mxu3 %v1783_v39 }
 0x730   :  { %1061 = vmatpush.msrb.mxu3 %v1788_v40 }
 0x732   :  { %1062 = vmatpush.msrb.mxu3 %v1793_v41 }
 0x734   :  { %1063 = vmatpush.msrb.mxu3 %v1798_v42 }
 0x736   :  { %1064 = vmatpush.msrb.mxu3 %v1808_v45 }
 0x7a3   :  { %v568_v3 = vpop.f32.mrf.mxu1 }
 0x7a4   :  { %v572_v4 = vrot.slane %v568_v3, 5 }
 0x7a6   :  { %v574_v63 = vadd.f32 %v572_v4, %v1763_v14 }
 0x7a8   :  { %1411 = vtanh.f32 %v574_v63  ;;  %v1337_v9 = vmul.f32 -1.442695, %v574_v63 }
 0x7aa   :  { %v506_v6 = vpop.f32.mrf.mxu3 }
 0x7ab   :  { %v507_v0 = vadd.f32 %v506_v6, %v1839_v48 }
 0x7ad   :  { %1413 = vtanh.f32 %v507_v0  ;;  %v1335_v2 = vmul.f32 -1.442695, %v507_v0 }
 0x7ae   :  { %v1412_v8 = vpop.eup %1411 }
 0x7af   :  { %600 = vrot.lane.b32.xlu1 %v1412_v8, %s1665_s30  ;;  %1415 = vpow2.f32 %v1335_v2 }
 0x7b3   :  { %v1414_v1 = vpop.eup %1413 }
 0x7b4   :  { %531 = vrot.lane.b32.xlu2 %v1414_v1, %s1665_s30 }
 0x7b5   :  { %v1416_v5 = vpop.eup %1415 }
 0x7b6   :  { %v512_v7 = vadd.f32 1.0, %v1416_v5 }
 0x7b8   :  { %1417 = vrcp.f32 %v512_v7  ;;  %v524_v18 = vand.u32 2147483648, %v512_v7  ;;  %vm518_vm9 = vweird.f32 %v512_v7  ;;  %v522_v19 = vand.u32 2147483647, %v512_v7 }
 0x7b9   :  { %1419 = vpow2.f32 %v1337_v9 }
 0x7ba   :  { %v525_v22 = vor.u32 1.1754944e-38, %v524_v18  ;;  %vm523_vm11 = vcmp.eq.f32.partialorder %v522_v19, 8.507059e+37 }
 0x7be   :  { %v1418_v10 = vpop.eup %1417 }
 0x7bf   :  { %v514_v11 = vmul.f32 %v1418_v10, %v512_v7  ;;  %v1420_v12 = vpop.eup %1419  ;;  %vm519_vm8 = vweird.f32 %v1418_v10 }
 0x7c0   :  { %v578_v15 = vadd.f32 1.0, %v1420_v12  ;;  %vm520_vm10 = vmor %vm518_vm9, %vm519_vm8 }
 0x7c1   :  { %v515_v13 = vsub.f32 1.0, %v514_v11 }
 0x7c2   :  { %1421 = vrcp.f32 %v578_v15  ;;  %v590_v31 = vand.u32 2147483648, %v578_v15  ;;  %vm584_vm13 = vweird.f32 %v578_v15  ;;  %v588_v32 = vand.u32 2147483647, %v578_v15 }
 0x7c3   :  { %v516_v16 = vmul.f32 %v1418_v10, %v515_v13 }
 0x7c4   :  { %v591_v43 = vor.u32 1.1754944e-38, %v590_v31  ;;  %vm589_vm15 = vcmp.eq.f32.partialorder %v588_v32, 8.507059e+37 }
 0x7c5   :  { %v517_v17 = vadd.f32 %v1418_v10, %v516_v16 }
 0x7c7   :  { %v521_v21 = vsel %vm520_vm10, %v1418_v10, %v517_v17 }
 0x7c8   :  { %v1422_v20 = vpop.eup %1421  ;;  %v526_v24 = vsel %vm523_vm11, %v525_v22, %v521_v21 }
 0x7c9   :  { %v580_v25 = vmul.f32 %v1422_v20, %v578_v15  ;;  %vm585_vm12 = vweird.f32 %v1422_v20  ;;  %v529_v50 = vmul.f32 %v526_v24, %v1890_v52 }
 0x7ca   :  { %vm586_vm14 = vmor %vm584_vm13, %vm585_vm12 }
 0x7cb   :  { %v581_v27 = vsub.f32 1.0, %v580_v25 }
 0x7cd   :  { %v582_v28 = vmul.f32 %v1422_v20, %v581_v27 }
 0x7cf   :  { %v583_v30 = vadd.f32 %v1422_v20, %v582_v28 }
 0x7d1   :  { %v587_v33 = vsel %vm586_vm14, %v1422_v20, %v583_v30 }
 0x7d2   :  { %v592_v46 = vsel %vm589_vm15, %v591_v43, %v587_v33 }
 0x7d3   :  { %v598_v54 = vmul.f32 %v596_v35, %v592_v46 }
 0x80e   :  { %v532_v23 = vpop.permute.xlu2 %531 }
 0x80f   :  { %v534_v26 = vmul.f32 %v532_v23, %v526_v24 }
 0x811   :  { %536 = vrot.lane.b32.xlu1 %v534_v26, %s1666_s3 }
 0x821   :  { %v601_v44 = vpop.permute.xlu1 %600 }
 0x822   :  { %v603_v47 = vmul.f32 %v601_v44, %v592_v46 }
 0x824   :  { %605 = vrot.lane.b32.xlu0 %v603_v47, %s1666_s3 }
 0x883   :  { %v537_v34 = vpop.permute.xlu1 %536 }
 0x884   :  { %v1919_v51 = vadd.f32 %v537_v34, %v529_v50 }
 0x886   :  { %1423 = vtanh.f32 %v1919_v51 }
 0x88c   :  { %v1424_v53 = vpop.eup %1423 }
 0x88d   :  { %542 = vrot.lane.b32.xlu0 %v1424_v53, %s1665_s30 }
 0x896   :  { %v606_v55 = vpop.permute.xlu0 %605 }
 0x897   :  { %v1924_v56 = vadd.f32 %v606_v55, %v598_v54 }
 0x899   :  { %1425 = vtanh.f32 %v1924_v56  ;;  %v736_v47 = vrot.slane %v1924_v56, 7 }
 0x89f   :  { %v1426_v57 = vpop.eup %1425 }
 0x8a0   :  { %611 = vrot.lane.b32.xlu2 %v1426_v57, %s1665_s30 }
 0x8fa   :  { %v612_v52 = vpop.permute.xlu2 %611 }
 0x8fb   :  { %v614_v58 = vmul.f32 %v612_v52, %v592_v46 }
 0x8fd   :  { %v686_v29 = vrot.slane %v614_v58, 3  ;;  %616 = vrot.lane.b32.xlu2 %v614_v58, %s1666_s3 }
 0x8ff   :  { %687 = vrot.lane.b32.xlu1 %v686_v29, %s1666_s3  ;;  %v543_v59 = vpop.permute.xlu0 %542 }
 0x900   :  { %v545_v60 = vmul.f32 %v543_v59, %v526_v24 }
 0x902   :  { %v620_v61 = vrot.slane %v545_v60, 5 }
 0x904   :  { %621 = vrot.lane.b32.xlu0 %v620_v61, %s1665_s30 }
 0x957   :  { %v617_v62 = vpop.permute.xlu2 %616 }
 0x971   :  { %v688_v49 = vpop.permute.xlu1 %687 }
 0x972   :  { %1340 = vmatmul.msk.f32.vlgmr.msra.gmra.mxu0 %vm105_vm0, %v688_v49 }
 0x976   :  { %v622_v3 = vpop.permute.xlu0 %621 }
 0x977   :  { %v624_v4 = vsel %vm105_vm0, %v617_v62, %v622_v3 }
 0x978   :  { %v626_v63 = vrot.slane %v624_v4, 3 }
 0x97a   :  { %1338 = vmatmul.msk.f32.vlgmr.msrb.gmra.mxu2 %vm208_vm5, %v626_v63 }
 0x97b   :  { %1197 = vmatpush.msrb.mxu2 %v1772_v36 }
 0x97d   :  { %1198 = vmatpush.msrb.mxu2 %v1774_v37 }
 0x97f   :  { %1199 = vmatpush.msrb.mxu2 %v1778_v38 }
 0x981   :  { %1200 = vmatpush.msrb.mxu2 %v1783_v39 }
 0x983   :  { %1201 = vmatpush.msrb.mxu2 %v1788_v40 }
 0x985   :  { %1202 = vmatpush.msrb.mxu2 %v1793_v41 }
 0x987   :  { %1203 = vmatpush.msrb.mxu2 %v1798_v42 }
 0x989   :  { %1204 = vmatpush.msrb.mxu2 %v1808_v45 }
 0x9ef   :  { %v708_v6 = vpop.f32.mrf.mxu0 }
 0x9f0   :  { %v712_v0 = vrot.slane %v708_v6, 4 }
 0x9f2   :  { %v714_v8 = vadd.f32 %v712_v0, %v1763_v14 }
 0x9f4   :  { %1427 = vtanh.f32 %v714_v8  ;;  %v1341_v42 = vmul.f32 -1.442695, %v714_v8 }
 0x9fa   :  { %v1428_v36 = vpop.eup %1427 }
 0x9fb   :  { %740 = vrot.lane.b32.xlu1 %v1428_v36, %s1665_s30 }
 0x9fd   :  { %v646_v37 = vpop.f32.mrf.mxu2 }
 0x9fe   :  { %v647_v38 = vadd.f32 %v646_v37, %v1839_v48 }
 0xa00   :  { %1429 = vtanh.f32 %v647_v38  ;;  %v1339_v40 = vmul.f32 -1.442695, %v647_v38 }
 0xa02   :  { %1431 = vpow2.f32 %v1339_v40 }
 0xa03   :  { %1433 = vpow2.f32 %v1341_v42 }
 0xa06   :  { %v1430_v39 = vpop.eup %1429 }
 0xa07   :  { %671 = vrot.lane.b32.xlu2 %v1430_v39, %s1665_s30 }
 0xa08   :  { %v1432_v41 = vpop.eup %1431 }
 0xa09   :  { %v652_v45 = vadd.f32 1.0, %v1432_v41  ;;  %v1434_v1 = vpop.eup %1433 }
 0xa0a   :  { %v718_v5 = vadd.f32 1.0, %v1434_v1 }
 0xa0b   :  { %1435 = vrcp.f32 %v652_v45  ;;  %v664_v15 = vand.u32 2147483648, %v652_v45  ;;  %vm658_vm2 = vweird.f32 %v652_v45  ;;  %v662_v16 = vand.u32 2147483647, %v652_v45 }
 0xa0c   :  { %1437 = vrcp.f32 %v718_v5  ;;  %v730_v25 = vand.u32 2147483648, %v718_v5  ;;  %vm724_vm7 = vweird.f32 %v718_v5  ;;  %v728_v26 = vand.u32 2147483647, %v718_v5 }
 0xa0d   :  { %v665_v19 = vor.u32 1.1754944e-38, %v664_v15  ;;  %vm663_vm4 = vcmp.eq.f32.partialorder %v662_v16, 8.507059e+37 }
 0xa0e   :  { %v731_v28 = vor.u32 1.1754944e-38, %v730_v25  ;;  %vm729_vm9 = vcmp.eq.f32.partialorder %v728_v26, 8.507059e+37 }
 0xa11   :  { %v1436_v2 = vpop.eup %1435 }
 0xa12   :  { %v654_v7 = vmul.f32 %v1436_v2, %v652_v45  ;;  %v1438_v11 = vpop.eup %1437  ;;  %vm659_vm1 = vweird.f32 %v1436_v2 }
 0xa13   :  { %v720_v13 = vmul.f32 %v1438_v11, %v718_v5  ;;  %vm660_vm3 = vmor %vm658_vm2, %vm659_vm1  ;;  %vm725_vm6 = vweird.f32 %v1438_v11 }
 0xa14   :  { %v655_v9 = vsub.f32 1.0, %v654_v7  ;;  %vm726_vm8 = vmor %vm724_vm7, %vm725_vm6 }
 0xa15   :  { %v721_v18 = vsub.f32 1.0, %v720_v13 }
 0xa16   :  { %v656_v10 = vmul.f32 %v1436_v2, %v655_v9 }
 0xa17   :  { %v722_v23 = vmul.f32 %v1438_v11, %v721_v18 }
 0xa18   :  { %v657_v12 = vadd.f32 %v1436_v2, %v656_v10 }
 0xa19   :  { %v723_v24 = vadd.f32 %v1438_v11, %v722_v23 }
 0xa1a   :  { %v661_v17 = vsel %vm660_vm3, %v1436_v2, %v657_v12 }
 0xa1b   :  { %v666_v21 = vsel %vm663_vm4, %v665_v19, %v661_v17  ;;  %v727_v27 = vsel %vm726_vm8, %v1438_v11, %v723_v24 }
 0xa1c   :  { %v732_v31 = vsel %vm729_vm9, %v731_v28, %v727_v27  ;;  %v669_v33 = vmul.f32 %v666_v21, %v1919_v51 }
 0xa1d   :  { %v738_v50 = vmul.f32 %v736_v47, %v732_v31 }
 0xa61   :  { %v672_v20 = vpop.permute.xlu2 %671 }
 0xa62   :  { %v674_v22 = vmul.f32 %v672_v20, %v666_v21 }
 0xa64   :  { %676 = vrot.lane.b32.xlu1 %v674_v22, %s1666_s3 }
 0xa6d   :  { %v741_v30 = vpop.permute.xlu1 %740 }
 0xa6e   :  { %v743_v32 = vmul.f32 %v741_v30, %v732_v31 }
 0xa70   :  { %745 = vrot.lane.b32.xlu0 %v743_v32, %s1666_s3 }
 0xad6   :  { %v677_v43 = vpop.permute.xlu1 %676 }
 0xad7   :  { %v1949_v44 = vadd.f32 %v677_v43, %v669_v33 }
 0xad9   :  { %1439 = vtanh.f32 %v1949_v44 }
 0xadf   :  { %v1440_v46 = vpop.eup %1439 }
 0xae0   :  { %682 = vrot.lane.b32.xlu0 %v1440_v46, %s1665_s30 }
 0xae2   :  { %v746_v34 = vpop.permute.xlu0 %745 }
 0xae3   :  { %v1954_v53 = vadd.f32 %v746_v34, %v738_v50 }
 0xae5   :  { %1441 = vtanh.f32 %v1954_v53  ;;  %v876_v32 = vrot.slane %v1954_v53, 7 }
 0xaeb   :  { %v1442_v35 = vpop.eup %1441 }
 0xaec   :  { %751 = vrot.lane.b32.xlu2 %v1442_v35, %s1665_s30 }
 0xb46   :  { %v752_v51 = vpop.permute.xlu2 %751 }
 0xb47   :  { %v754_v54 = vmul.f32 %v752_v51, %v732_v31 }
 0xb49   :  { %v826_v55 = vrot.slane %v754_v54, 4  ;;  %756 = vrot.lane.b32.xlu2 %v754_v54, %s1666_s3 }
 0xb4b   :  { %827 = vrot.lane.b32.xlu1 %v826_v55, %s1666_s3 }
 0xb52   :  { %v683_v57 = vpop.permute.xlu0 %682 }
 0xb53   :  { %v685_v56 = vmul.f32 %v683_v57, %v666_v21 }
 0xb55   :  { %v760_v52 = vrot.slane %v685_v56, 4 }
 0xb57   :  { %761 = vrot.lane.b32.xlu0 %v760_v52, %s1665_s30 }
 0xba3   :  { %v757_v29 = vpop.permute.xlu2 %756 }
 0xbbd   :  { %v828_v58 = vpop.permute.xlu1 %827 }
 0xbbe   :  { %1344 = vmatmul.msk.f32.vlgmr.msra.gmra.mxu3 %vm105_vm0, %v828_v58 }
 0xbc9   :  { %v762_v59 = vpop.permute.xlu0 %761 }
 0xbca   :  { %v764_v60 = vsel %vm105_vm0, %v757_v29, %v762_v59 }
 0xbcb   :  { %v766_v61 = vrot.slane %v764_v60, 4 }
 0xbcd   :  { %1342 = vmatmul.msk.f32.vlgmr.msrb.gmra.mxu1 %vm208_vm5, %v766_v61 }
 0xc41   :  { %v848_v49 = vpop.f32.mrf.mxu3 }
 0xc42   :  { %v852_v62 = vrot.slane %v848_v49, 3 }
 0xc44   :  { %v854_v3 = vadd.f32 %v852_v62, %v1763_v14 }
 0xc46   :  { %1443 = vtanh.f32 %v854_v3  ;;  %v1345_v38 = vmul.f32 -1.442695, %v854_v3 }
 0xc4a   :  { %v786_v4 = vpop.f32.mrf.mxu1 }
 0xc4b   :  { %v787_v63 = vadd.f32 %v786_v4, %v1839_v48 }
 0xc4c   :  { %v1444_v6 = vpop.eup %1443 }
 0xc4d   :  { %1445 = vtanh.f32 %v787_v63  ;;  %880 = vrot.lane.b32.xlu1 %v1444_v6, %s1665_s30  ;;  %v1343_v8 = vmul.f32 -1.442695, %v787_v63 }
 0xc4f   :  { %1447 = vpow2.f32 %v1343_v8 }
 0xc53   :  { %v1446_v0 = vpop.eup %1445 }
 0xc54   :  { %811 = vrot.lane.b32.xlu2 %v1446_v0, %s1665_s30 }
 0xc55   :  { %v1448_v36 = vpop.eup %1447 }
 0xc56   :  { %v792_v37 = vadd.f32 1.0, %v1448_v36 }
 0xc58   :  { %1449 = vrcp.f32 %v792_v37  ;;  %v804_v5 = vand.u32 2147483648, %v792_v37  ;;  %vm798_vm11 = vweird.f32 %v792_v37  ;;  %v802_v9 = vand.u32 2147483647, %v792_v37 }
 0xc59   :  { %1451 = vpow2.f32 %v1345_v38 }
 0xc5a   :  { %v805_v11 = vor.u32 1.1754944e-38, %v804_v5  ;;  %vm803_vm13 = vcmp.eq.f32.partialorder %v802_v9, 8.507059e+37 }
 0xc5e   :  { %v1450_v39 = vpop.eup %1449 }
 0xc5f   :  { %v794_v40 = vmul.f32 %v1450_v39, %v792_v37  ;;  %v1452_v41 = vpop.eup %1451  ;;  %vm799_vm10 = vweird.f32 %v1450_v39 }
 0xc60   :  { %v858_v42 = vadd.f32 1.0, %v1452_v41  ;;  %vm800_vm12 = vmor %vm798_vm11, %vm799_vm10 }
 0xc61   :  { %v795_v45 = vsub.f32 1.0, %v794_v40 }
 0xc62   :  { %1453 = vrcp.f32 %v858_v42  ;;  %v870_v20 = vand.u32 2147483648, %v858_v42  ;;  %vm864_vm15 = vweird.f32 %v858_v42  ;;  %v868_v21 = vand.u32 2147483647, %v858_v42 }
 0xc63   :  { %v796_v1 = vmul.f32 %v1450_v39, %v795_v45 }
 0xc64   :  { %v871_v23 = vor.u32 1.1754944e-38, %v870_v20  ;;  %vm869_vm2 = vcmp.eq.f32.partialorder %v868_v21, 8.507059e+37 }
 0xc65   :  { %v797_v2 = vadd.f32 %v1450_v39, %v796_v1 }
 0xc67   :  { %v801_v10 = vsel %vm800_vm12, %v1450_v39, %v797_v2 }
 0xc68   :  { %v1454_v7 = vpop.eup %1453  ;;  %v806_v15 = vsel %vm803_vm13, %v805_v11, %v801_v10 }
 0xc69   :  { %v860_v12 = vmul.f32 %v1454_v7, %v858_v42  ;;  %vm865_vm14 = vweird.f32 %v1454_v7  ;;  %v809_v27 = vmul.f32 %v806_v15, %v1949_v44 }
 0xc6a   :  { %vm866_vm1 = vmor %vm864_vm15, %vm865_vm14 }
 0xc6b   :  { %v861_v17 = vsub.f32 1.0, %v860_v12 }
 0xc6d   :  { %v862_v18 = vmul.f32 %v1454_v7, %v861_v17 }
 0xc6f   :  { %v863_v19 = vadd.f32 %v1454_v7, %v862_v18 }
 0xc71   :  { %v867_v22 = vsel %vm866_vm1, %v1454_v7, %v863_v19 }
 0xc72   :  { %v872_v25 = vsel %vm869_vm2, %v871_v23, %v867_v22 }
 0xc73   :  { %v878_v33 = vmul.f32 %v876_v32, %v872_v25 }
 0xcae   :  { %v812_v13 = vpop.permute.xlu2 %811 }
 0xcaf   :  { %v814_v16 = vmul.f32 %v812_v13, %v806_v15 }
 0xcb1   :  { %816 = vrot.lane.b32.xlu1 %v814_v16, %s1666_s3 }
 0xcbf   :  { %v881_v24 = vpop.permute.xlu1 %880 }
 0xcc0   :  { %v883_v26 = vmul.f32 %v881_v24, %v872_v25 }
 0xcc2   :  { %885 = vrot.lane.b32.xlu0 %v883_v26, %s1666_s3 }
 0xd23   :  { %v817_v28 = vpop.permute.xlu1 %816 }
 0xd24   :  { %v1971_v30 = vadd.f32 %v817_v28, %v809_v27 }
 0xd26   :  { %1455 = vtanh.f32 %v1971_v30 }
 0xd2c   :  { %v1456_v31 = vpop.eup %1455 }
 0xd2d   :  { %822 = vrot.lane.b32.xlu0 %v1456_v31, %s1665_s30 }
 0xd34   :  { %v886_v43 = vpop.permute.xlu0 %885 }
 0xd35   :  { %v1976_v46 = vadd.f32 %v886_v43, %v878_v33 }
 0xd37   :  { %1457 = vtanh.f32 %v1976_v46  ;;  %v1016_v21 = vrot.slane %v1976_v46, 7 }
 0xd3d   :  { %v1458_v47 = vpop.eup %1457 }
 0xd3e   :  { %891 = vrot.lane.b32.xlu2 %v1458_v47, %s1665_s30 }
 0xd98   :  { %v892_v44 = vpop.permute.xlu2 %891 }
 0xd99   :  { %v894_v50 = vmul.f32 %v892_v44, %v872_v25 }
 0xd9b   :  { %v966_v34 = vrot.slane %v894_v50, 5  ;;  %896 = vrot.lane.b32.xlu2 %v894_v50, %s1666_s3 }
 0xd9d   :  { %967 = vrot.lane.b32.xlu1 %v966_v34, %s1666_s3 }
 0xd9f   :  { %v823_v35 = vpop.permute.xlu0 %822 }
 0xda0   :  { %v825_v51 = vmul.f32 %v823_v35, %v806_v15 }
 0xda2   :  { %v900_v54 = vrot.slane %v825_v51, 3 }
 0xda4   :  { %901 = vrot.lane.b32.xlu0 %v900_v54, %s1665_s30 }
 0xdf5   :  { %v897_v55 = vpop.permute.xlu2 %896 }
 0xe0f   :  { %v968_v53 = vpop.permute.xlu1 %967 }
 0xe10   :  { %1348 = vmatmul.msk.f32.vlgmr.msra.gmra.mxu2 %vm105_vm0, %v968_v53 }
 0xe16   :  { %v902_v57 = vpop.permute.xlu0 %901 }
 0xe17   :  { %v904_v56 = vsel %vm105_vm0, %v897_v55, %v902_v57 }
 0xe18   :  { %v906_v52 = vrot.slane %v904_v56, 5  ;;  %v2012_v56 = vld [vmem:[%s2047_s5] sm:$0x1] }
 0xe1a   :  { %1346 = vmatmul.msk.f32.vlgmr.msrb.gmra.mxu0 %vm208_vm5, %v906_v52 }
 0xe93   :  { %v988_v58 = vpop.f32.mrf.mxu2 }
 0xe94   :  { %v992_v29 = vrot.slane %v988_v58, 2 }
 0xe96   :  { %v994_v59 = vadd.f32 %v992_v29, %v1763_v14 }
 0xe97   :  { %v926_v60 = vpop.f32.mrf.mxu0 }
 0xe98   :  { %1459 = vtanh.f32 %v994_v59  ;;  %v927_v61 = vadd.f32 %v926_v60, %v1839_v48  ;;  %v1349_v3 = vmul.f32 -1.442695, %v994_v59 }
 0xe9a   :  { %1461 = vtanh.f32 %v927_v61  ;;  %v1347_v8 = vmul.f32 -1.442695, %v927_v61 }
 0xe9b   :  { %1463 = vpow2.f32 %v1349_v3 }
 0xe9e   :  { %v1460_v49 = vpop.eup %1459 }
 0xe9f   :  { %1020 = vrot.lane.b32.xlu2 %v1460_v49, %s1665_s30 }
 0xea0   :  { %v1462_v62 = vpop.eup %1461 }
 0xea1   :  { %951 = vrot.lane.b32.xlu1 %v1462_v62, %s1665_s30  ;;  %v1464_v4 = vpop.eup %1463 }
 0xea2   :  { %v998_v63 = vadd.f32 1.0, %v1464_v4 }
 0xea4   :  { %1465 = vrcp.f32 %v998_v63  ;;  %v1010_v39 = vand.u32 2147483648, %v998_v63  ;;  %vm1004_vm4 = vweird.f32 %v998_v63  ;;  %v1008_v41 = vand.u32 2147483647, %v998_v63 }
 0xea5   :  { %1467 = vpow2.f32 %v1347_v8 }
 0xea6   :  { %v1011_v45 = vor.u32 1.1754944e-38, %v1010_v39  ;;  %vm1009_vm7 = vcmp.eq.f32.partialorder %v1008_v41, 8.507059e+37 }
 0xeaa   :  { %v1466_v6 = vpop.eup %1465 }
 0xeab   :  { %v1000_v0 = vmul.f32 %v1466_v6, %v998_v63  ;;  %v1468_v38 = vpop.eup %1467  ;;  %vm1005_vm3 = vweird.f32 %v1466_v6 }
 0xeac   :  { %v932_v40 = vadd.f32 1.0, %v1468_v38  ;;  %vm1006_vm6 = vmor %vm1004_vm4, %vm1005_vm3 }
 0xead   :  { %v1001_v36 = vsub.f32 1.0, %v1000_v0 }
 0xeae   :  { %1469 = vrcp.f32 %v932_v40  ;;  %v944_v13 = vand.u32 2147483648, %v932_v40  ;;  %vm938_vm9 = vweird.f32 %v932_v40  ;;  %v942_v15 = vand.u32 2147483647, %v932_v40 }
 0xeaf   :  { %v1002_v37 = vmul.f32 %v1466_v6, %v1001_v36 }
 0xeb0   :  { %v945_v17 = vor.u32 1.1754944e-38, %v944_v13  ;;  %vm943_vm11 = vcmp.eq.f32.partialorder %v942_v15, 8.507059e+37 }
 0xeb1   :  { %v1003_v48 = vadd.f32 %v1466_v6, %v1002_v37 }
 0xeb3   :  { %v1007_v42 = vsel %vm1006_vm6, %v1466_v6, %v1003_v48 }
 0xeb4   :  { %v1012_v2 = vsel %vm1009_vm7, %v1011_v45, %v1007_v42  ;;  %v1470_v7 = vpop.eup %1469 }
 0xeb5   :  { %v934_v9 = vmul.f32 %v1470_v7, %v932_v40  ;;  %vm939_vm8 = vweird.f32 %v1470_v7  ;;  %v1018_v22 = vmul.f32 %v1016_v21, %v1012_v2 }
 0xeb6   :  { %vm940_vm10 = vmor %vm938_vm9, %vm939_vm8  ;;  %vm1250_vm8 = vcmask 253952  }
 0xeb7   :  { %v935_v10 = vsub.f32 1.0, %v934_v9 }
 0xeb9   :  { %v936_v11 = vmul.f32 %v1470_v7, %v935_v10 }
 0xebb   :  { %v937_v12 = vadd.f32 %v1470_v7, %v936_v11 }
 0xebd   :  { %v941_v16 = vsel %vm940_vm10, %v1470_v7, %v937_v12 }
 0xebe   :  { %v946_v19 = vsel %vm943_vm11, %v945_v17, %v941_v16 }
 0xebf   :  { %v949_v26 = vmul.f32 %v946_v19, %v1971_v30 }
 0xef9   :  { %v1021_v1 = vpop.permute.xlu2 %1020 }
 0xefa   :  { %v1023_v5 = vmul.f32 %v1021_v1, %v1012_v2 }
 0xefc   :  { %1025 = vrot.lane.b32.xlu1 %v1023_v5, %s1666_s3 }
 0xf13   :  { %v952_v18 = vpop.permute.xlu1 %951 }
 0xf14   :  { %v954_v20 = vmul.f32 %v952_v18, %v946_v19 }
 0xf16   :  { %956 = vrot.lane.b32.xlu0 %v954_v20, %s1666_s3 }
 0xf6e   :  { %v1026_v23 = vpop.permute.xlu1 %1025 }
 0xf6f   :  { %v1993_v24 = vadd.f32 %v1026_v23, %v1018_v22 }
 0xf71   :  { %1471 = vtanh.f32 %v1993_v24  ;;  %v1156_v15 = vrot.slane %v1993_v24, 7 }
 0xf77   :  { %v1472_v25 = vpop.eup %1471 }
 0xf78   :  { %1031 = vrot.lane.b32.xlu0 %v1472_v25, %s1665_s30 }
 0xf88   :  { %v957_v27 = vpop.permute.xlu0 %956 }
 0xf89   :  { %v1998_v28 = vadd.f32 %v957_v27, %v949_v26 }
 0xf8b   :  { %1473 = vtanh.f32 %v1998_v28 }
 0xf91   :  { %v1474_v31 = vpop.eup %1473 }
 0xf92   :  { %962 = vrot.lane.b32.xlu2 %v1474_v31, %s1665_s30 }
 0xfea   :  { %v1032_v32 = vpop.permute.xlu0 %1031 }
 0xfeb   :  { %v1034_v33 = vmul.f32 %v1032_v32, %v1012_v2 }
 0xfec   :  { %v963_v46 = vpop.permute.xlu2 %962 }
 0xfed   :  { %v1106_v43 = vrot.slane %v1034_v33, 6  ;;  %1036 = vrot.lane.b32.xlu1 %v1034_v33, %s1666_s3  ;;  %v965_v47 = vmul.f32 %v963_v46, %v946_v19 }
 0xfef   :  { %1107 = vrot.lane.b32.xlu0 %v1106_v43, %s1666_s3  ;;  %v1040_v44 = vrot.slane %v965_v47, 2 }
 0xff1   :  { %1041 = vrot.lane.b32.xlu2 %v1040_v44, %s1665_s30 }
0x104b   :  { %v1042_v30 = vpop.permute.xlu2 %1041 }
0x105f   :  { %v1037_v50 = vpop.permute.xlu1 %1036 }
0x1060   :  { %v1044_v34 = vsel %vm105_vm0, %v1037_v50, %v1042_v30 }
0x1061   :  { %v1046_v35 = vrot.slane %v1044_v34, 6  ;;  %v1108_v51 = vpop.permute.xlu0 %1107 }
0x1062   :  { %1352 = vmatmul.msk.f32.vlgmr.msra.gmra.mxu1 %vm105_vm0, %v1108_v51 }
0x1063   :  { %1350 = vmatmul.msk.f32.vlgmr.msrb.gmra.mxu3 %vm208_vm5, %v1046_v35  ;;  %v1370_v35 = vld [vmem:[%s2048_s6] ss:$0 sm:$0xff] }
0x10df   :  { %v1128_v54 = vpop.f32.mrf.mxu1 }
0x10e0   :  { %v1132_v53 = vrot.slane %v1128_v54, 1 }
0x10e2   :  { %v1134_v55 = vadd.f32 %v1132_v53, %v1763_v14 }
0x10e4   :  { %1475 = vtanh.f32 %v1134_v55  ;;  %v1353_v59 = vmul.f32 -1.442695, %v1134_v55 }
0x10e6   :  { %v1066_v57 = vpop.f32.mrf.mxu3 }
0x10e7   :  { %v1067_v52 = vadd.f32 %v2012_v56, %v1066_v57 }
0x10e9   :  { %1477 = vtanh.f32 %v1067_v52  ;;  %v1351_v62 = vmul.f32 -1.442695, %v1067_v52 }
0x10ea   :  { %v1476_v58 = vpop.eup %1475  ;;  %1479 = vpow2.f32 %v1353_v59 }
0x10eb   :  { %1160 = vrot.lane.b32.xlu2 %v1476_v58, %s1665_s30 }
0x10ef   :  { %v1478_v29 = vpop.eup %1477 }
0x10f0   :  { %1091 = vrot.lane.b32.xlu1 %v1478_v29, %s1665_s30  ;;  %v1480_v60 = vpop.eup %1479 }
0x10f1   :  { %v1138_v14 = vadd.f32 1.0, %v1480_v60 }
0x10f3   :  { %1481 = vrcp.f32 %v1138_v14  ;;  %v1150_v0 = vand.u32 2147483648, %v1138_v14  ;;  %vm1144_vm13 = vweird.f32 %v1138_v14  ;;  %v1148_v8 = vand.u32 2147483647, %v1138_v14 }
0x10f4   :  { %1483 = vpow2.f32 %v1351_v62 }
0x10f5   :  { %v1151_v38 = vor.u32 1.1754944e-38, %v1150_v0  ;;  %vm1149_vm15 = vcmp.eq.f32.partialorder %v1148_v8, 8.507059e+37 }
0x10f9   :  { %v1482_v61 = vpop.eup %1481 }
0x10fa   :  { %v1140_v49 = vmul.f32 %v1482_v61, %v1138_v14  ;;  %vm1145_vm12 = vweird.f32 %v1482_v61  ;;  %v1484_v6 = vpop.eup %1483 }
0x10fb   :  { %vm1146_vm14 = vmor %vm1144_vm13, %vm1145_vm12  ;;  %v1072_v36 = vadd.f32 1.0, %v1484_v6  ;;  %vm1287_vm12 = vcmask 0  }
0x10fc   :  { %v1141_v3 = vsub.f32 1.0, %v1140_v49 }
0x10fd   :  { %1485 = vrcp.f32 %v1072_v36  ;;  %v1084_v5 = vand.u32 2147483648, %v1072_v36  ;;  %vm1078_vm2 = vweird.f32 %v1072_v36  ;;  %v1082_v7 = vand.u32 2147483647, %v1072_v36 }
0x10fe   :  { %v1142_v4 = vmul.f32 %v1482_v61, %v1141_v3 }
0x10ff   :  { %v1085_v10 = vor.u32 1.1754944e-38, %v1084_v5  ;;  %vm1083_vm4 = vcmp.eq.f32.partialorder %v1082_v7, 8.507059e+37 }
0x1100   :  { %v1143_v63 = vadd.f32 %v1482_v61, %v1142_v4 }
0x1102   :  { %v1147_v37 = vsel %vm1146_vm14, %v1482_v61, %v1143_v63 }
0x1103   :  { %v1152_v48 = vsel %vm1149_vm15, %v1151_v38, %v1147_v37  ;;  %v1486_v41 = vpop.eup %1485  ;;  %v1266_v38 = vld [vmem:[#allocation2] sm:$0x1] }
0x1104   :  { %v1074_v42 = vmul.f32 %v1486_v41, %v1072_v36  ;;  %vm1079_vm1 = vweird.f32 %v1486_v41  ;;  %v1158_v16 = vmul.f32 %v1156_v15, %v1152_v48 }
0x1105   :  { %vm1080_vm3 = vmor %vm1078_vm2, %vm1079_vm1 }
0x1106   :  { %v1075_v45 = vsub.f32 1.0, %v1074_v42 }
0x1108   :  { %v1076_v1 = vmul.f32 %v1486_v41, %v1075_v45 }
0x110a   :  { %v1077_v2 = vadd.f32 %v1486_v41, %v1076_v1 }
0x110c   :  { %v1081_v9 = vsel %vm1080_vm3, %v1486_v41, %v1077_v2 }
0x110d   :  { %v1086_v12 = vsel %vm1083_vm4, %v1085_v10, %v1081_v9 }
0x110e   :  { %v1089_v20 = vmul.f32 %v1086_v12, %v1998_v28 }
0x1145   :  { %v1161_v39 = vpop.permute.xlu2 %1160 }
0x1146   :  { %v1163_v40 = vmul.f32 %v1161_v39, %v1152_v48 }
0x1148   :  { %1165 = vrot.lane.b32.xlu1 %v1163_v40, %s1666_s3 }
0x1162   :  { %v1092_v11 = vpop.permute.xlu1 %1091 }
0x1163   :  { %v1094_v13 = vmul.f32 %v1092_v11, %v1086_v12 }
0x1165   :  { %1096 = vrot.lane.b32.xlu0 %v1094_v13, %s1666_s3 }
0x11ba   :  { %v1166_v17 = vpop.permute.xlu1 %1165 }
0x11bb   :  { %v1168_v18 = vadd.f32 %v1166_v17, %v1158_v16 }
0x11bd   :  { %1487 = vtanh.f32 %v1168_v18 }
0x11c3   :  { %v1488_v19 = vpop.eup %1487 }
0x11c4   :  { %1171 = vrot.lane.b32.xlu0 %v1488_v19, %s1665_s30 }
0x11d7   :  { %v1097_v21 = vpop.permute.xlu0 %1096 }
0x11d8   :  { %v1099_v22 = vadd.f32 %v1097_v21, %v1089_v20 }
0x11da   :  { %1489 = vtanh.f32 %v1099_v22 }
0x11e0   :  { %v1490_v23 = vpop.eup %1489 }
0x11e1   :  { %1102 = vrot.lane.b32.xlu2 %v1490_v23, %s1665_s30 }
0x1236   :  { %v1172_v25 = vpop.permute.xlu0 %1171 }
0x1237   :  { %v1174_v26 = vmul.f32 %v1172_v25, %v1152_v48 }
0x1239   :  { %1176 = vrot.lane.b32.xlu1 %v1174_v26, %s1666_s3 }
0x123b   :  { %v1103_v24 = vpop.permute.xlu2 %1102 }
0x123c   :  { %v1105_v27 = vmul.f32 %v1103_v24, %v1086_v12 }
0x123e   :  { %v1180_v31 = vrot.slane %v1105_v27, 1 }
0x1240   :  { %1181 = vrot.lane.b32.xlu2 %v1180_v31, %s1665_s30 }
0x129a   :  { %v1182_v32 = vpop.permute.xlu2 %1181 }
0x12ab   :  { %v1177_v33 = vpop.permute.xlu1 %1176 }
0x12ac   :  { %v1184_v43 = vsel %vm105_vm0, %v1177_v33, %v1182_v32 }
0x12ad   :  { %v1186_v28 = vrot.slane %v1184_v43, 7 }
0x12af   :  { %1354 = vmatmul.msk.f32.vlgmr.msrb.gmra.mxu2 %vm208_vm5, %v1186_v28 }
0x1332   :  { %v1206_v46 = vpop.f32.mrf.mxu2 }
0x1333   :  { %v1207_v47 = vadd.f32 %v2012_v56, %v1206_v46 }
0x1335   :  { %1491 = vtanh.f32 %v1207_v47  ;;  %v1355_v30 = vmul.f32 -1.442695, %v1207_v47 }
0x1337   :  { %1493 = vpow2.f32 %v1355_v30 }
0x133b   :  { %v1492_v44 = vpop.eup %1491 }
0x133c   :  { %1231 = vrot.lane.b32.xlu0 %v1492_v44, %s1665_s30 }
0x133d   :  { %v1494_v50 = vpop.eup %1493 }
0x133e   :  { %v1212_v34 = vadd.f32 1.0, %v1494_v50 }
0x1340   :  { %1495 = vrcp.f32 %v1212_v34  ;;  %v1224_v56 = vand.u32 2147483648, %v1212_v34  ;;  %vm1218_vm5 = vweird.f32 %v1212_v34  ;;  %v1222_v52 = vand.u32 2147483647, %v1212_v34 }
0x1342   :  { %v1225_v29 = vor.u32 1.1754944e-38, %v1224_v56  ;;  %vm1223_vm7 = vcmp.eq.f32.partialorder %v1222_v52, 8.507059e+37 }
0x1344   :  { %1255 = vrot.lane.b32.xlu0 %v1370_v35, %s1667_s15 }
0x1346   :  { %v1496_v51 = vpop.eup %1495 }
0x1347   :  { %v1214_v54 = vmul.f32 %v1496_v51, %v1212_v34  ;;  %vm1219_vm0 = vweird.f32 %v1496_v51 }
0x1348   :  { %vm1220_vm6 = vmor %vm1218_vm5, %vm1219_vm0 }
0x1349   :  { %v1215_v53 = vsub.f32 1.0, %v1214_v54 }
0x134b   :  { %v1216_v55 = vmul.f32 %v1496_v51, %v1215_v53 }
0x134d   :  { %v1217_v57 = vadd.f32 %v1496_v51, %v1216_v55 }
0x134f   :  { %v1221_v58 = vsel %vm1220_vm6, %v1496_v51, %v1217_v57 }
0x1350   :  { %v1226_v60 = vsel %vm1223_vm7, %v1225_v29, %v1221_v58 }
0x1351   :  { %v1229_v61 = vmul.f32 %v1226_v60, %v1099_v22 }
0x13ae   :  { %v1232_v59 = vpop.permute.xlu0 %1231 }
0x13af   :  { %v1234_v14 = vmul.f32 %v1232_v59, %v1226_v60 }
0x13b1   :  { %1236 = vrot.lane.b32.xlu1 %v1234_v14, %s1666_s3 }
0x13b6   :  { %v1256_v63 = vpop.permute.xlu0 %1255 }
0x1423   :  { %v1237_v49 = vpop.permute.xlu1 %1236 }
0x1424   :  { %v1239_v62 = vadd.f32 %v1237_v49, %v1229_v61 }
0x1426   :  { %1497 = vtanh.f32 %v1239_v62 }
0x142c   :  { %v1498_v3 = vpop.eup %1497 }
0x142d   :  { %1242 = vrot.lane.b32.xlu2 %v1498_v3, %s1665_s30 }
0x1487   :  { %v1243_v4 = vpop.permute.xlu2 %1242 }
0x1488   :  { %v1245_v6 = vmul.f32 %v1243_v4, %v1226_v60 }
0x148a   :  { %v1258_v0 = vmul.f32 %v1256_v63, %v1245_v6  ;;  %1247 = vrot.lane.b32.xlu0 %v1245_v6, %s1666_s3 }
0x148c   :  { %1260 = vrot.lane.b32.xlu1 %v1258_v0, %s1666_s3 }
0x14fc   :  { %v1248_v8 = vpop.permute.xlu0 %1247 }
0x14fd   :  { %1251 = vst.msk [vmem:[#allocation11] sm:$0x1] %vm1250_vm8, %v1248_v8 }
0x14fe   :  { %v1261_v36 = vpop.permute.xlu1 %1260  ;;  %1299 = dma.vmem_to_hbm [thread:$0]  %s1295_s19, 16, %s1297_s17, [#allocation5]  }
0x14ff   :  { %v1263_v37 = vsel %vm1250_vm8, %v1261_v36, 0.0 }
0x1500   :  { %1264 = vadd.xlane.f32.xlu2 %v1263_v37 }
0x1573   :  { %v1265_v48 = vpop.xlane.xlu2 %1264 }
0x1574   :  { %v1267_v39 = vadd.f32 %v1266_v38, %v1265_v48 }
0x1576   :  { %v1356_v40 = vmul.f32 -1.442695, %v1267_v39 }
0x1578   :  { %1499 = vpow2.f32 %v1356_v40 }
0x157e   :  { %v1500_v41 = vpop.eup %1499 }
0x157f   :  { %v1271_v42 = vadd.f32 1.0, %v1500_v41 }
0x1581   :  { %1501 = vrcp.f32 %v1271_v42  ;;  %v1283_v5 = vand.u32 2147483648, %v1271_v42  ;;  %v1281_v9 = vand.u32 2147483647, %v1271_v42  ;;  %vm1277_vm10 = vweird.f32 %v1271_v42 }
0x1583   :  { %v1284_v11 = vor.u32 1.1754944e-38, %v1283_v5  ;;  %vm1282_vm13 = vcmp.eq.f32.partialorder %v1281_v9, 8.507059e+37 }
0x1587   :  { %v1502_v45 = vpop.eup %1501 }
0x1588   :  { %v1273_v1 = vmul.f32 %v1502_v45, %v1271_v42  ;;  %vm1278_vm9 = vweird.f32 %v1502_v45 }
0x1589   :  { %vm1279_vm11 = vmor %vm1277_vm10, %vm1278_vm9 }
0x158a   :  { %v1274_v2 = vsub.f32 1.0, %v1273_v1 }
0x158c   :  { %v1275_v7 = vmul.f32 %v1502_v45, %v1274_v2 }
0x158e   :  { %v1276_v10 = vadd.f32 %v1502_v45, %v1275_v7 }
0x1590   :  { %v1280_v12 = vsel %vm1279_vm11, %v1502_v45, %v1276_v10 }
0x1591   :  { %v1285_v13 = vsel %vm1282_vm13, %v1284_v11, %v1280_v12 }
0x1592   :  { %1288 = vst.msk [vmem:[#allocation12] sm:$0x1] %vm1287_vm12, %v1285_v13 }
0x1593   :  { %1310 = dma.vmem_to_hbm [thread:$0]  %s1306_s7, 16, %s1308_s22, [#allocation13]  }
0x1594   :  { %1654 = dma.done.wait [#allocation5], 16  }
0x1595   :  { %1655 = vsyncadd [#allocation5], 4294967280 }
0x1596   :  { %1656 = dma.done.wait [#allocation13], 16  }
0x1597   :  { %1657 = vsyncadd [#allocation13], 4294967280 }
0x1598   :  { %1319 = vsyncpa [#allocation4], 1 }
0x1599   :  { %1320 = vsyncpa [#allocation7], 1 }
0x159a   :  { %1321 = vsyncpa [#allocation10], 1 }
0x159b   :  { %1322 = vsyncpa [#allocation5], 1 }
0x159c   :  { %1323 = vsyncpa [#allocation13], 1 }

</bundles_post_ra>
